<compile_context>
chip_gen: v7x
topology: tpu7x:2x2x1
jax: 0.10.0
libtpu: 0.0.40
codegen_flags: <defaults>
</compile_context>

<pallas_src>
import functools
import math

import jax
import jax.numpy as jnp
from jax import lax
from jax.experimental import pallas as pl
from jax.experimental.pallas import tpu as pltpu

_LN_EPS = 1e-5


# ----------------------------- in-kernel helpers -----------------------------

def _layernorm(x, gamma, beta):
    mu = jnp.mean(x, axis=-1, keepdims=True)
    var = jnp.mean((x - mu) ** 2, axis=-1, keepdims=True)
    return (x - mu) * lax.rsqrt(var + _LN_EPS) * gamma + beta


def _mha_fused(xq_c, xkv_c, wqkv, wo, hmask, hrep, self_attn):
    """MultiHeadAttention with the module's no-softmax DotProductAttention.

    torch:  Qr,Kr,Vr = transpose_qkv(x @ W*)        (shape (B*H, dh))
            attn = Qr Kr^T / sqrt(dh)               (couples batch AND heads)
            out  = transpose_output(attn @ Vr) @ Wo
    With no softmax this equals, per batch row b and output head h,
            out[b, h-block] = Q_h[b] @ M_shared,  M_shared = sum_g K_g^T V_g,
    i.e.  out = Q @ (I_H (x) M_shared) @ Wo.  The 1/sqrt(dh) scale is folded
    into W_q host-side.  Everything below is full D-wide matmuls, no loops,
    no (B*H, dh) reshapes.  Intermediates that only feed other matmuls stay
    in the compute dtype (bf16 on the perf path) to avoid cast chatter.
    """
    d = wo.shape[0]
    cdt = wqkv.dtype

    if self_attn:
        # Fused QKV: one (B, D) @ (D, 3D) matmul, static lane slices.
        qkv = jnp.dot(xq_c, wqkv, preferred_element_type=cdt)
        q = qkv[:, :d]
        k = qkv[:, d:2 * d]
        v = qkv[:, 2 * d:]
    else:
        # Cross attention: separate Q projection, fused KV projection.
        q = jnp.dot(xq_c, wqkv[:, :d], preferred_element_type=cdt)
        kv = jnp.dot(xkv_c, wqkv[:, d:], preferred_element_type=cdt)
        k = kv[:, :d]
        v = kv[:, d:]

    # M_full = K^T V  (D, D); keep only the per-head diagonal dh x dh blocks.
    m_full = lax.dot_general(k, v, (((0,), (0,)), ((), ())),
                             preferred_element_type=cdt)
    m_diag = m_full * hmask

    # R M R replicates sum_g M_full[g,g] into every block (J_H (x) M_shared);
    # masking gives I_H (x) M_shared.  R is a 0/1 matrix -> exact in bf16, so
    # both matmuls run with compute-dtype operands (no f32 MXU passes).
    m_rep = jnp.dot(jnp.dot(hrep, m_diag, preferred_element_type=cdt),
                    hrep, preferred_element_type=cdt)
    w_kron = m_rep * hmask

    w_eff = jnp.dot(w_kron, wo, preferred_element_type=cdt)
    return jnp.dot(q, w_eff, preferred_element_type=jnp.float32)


def _ffn(y_c, w1, w2):
    cdt = w1.dtype
    h = jnp.dot(y_c, w1, preferred_element_type=cdt)
    h = jnp.maximum(h, 0.0)
    return jnp.dot(h, w2, preferred_element_type=jnp.float32)


def _block(xq, xkv, p, hmask, hrep, cdt, self_attn):
    """SelfBlock (self_attn=True) / CrossBlock (xq=item queries+residual)."""
    wqkv, wo, w1, w2, g1, b1, g2, b2 = p
    xq_c = xq.astype(cdt)
    xkv_c = xq_c if self_attn else xkv.astype(cdt)
    a = _mha_fused(xq_c, xkv_c, wqkv, wo, hmask, hrep, self_attn)
    y = _layernorm(a + xq, g1, b1)
    z = _ffn(y.astype(cdt), w1, w2)
    return _layernorm(z + y, g2, b2)


# --------------------------------- the kernel --------------------------------

def _transformerf_kernel(ue_ref, ie_ref, pos_ref,
                         wqkv_ref, wo_ref, wffn1_ref, wffn2_ref,
                         ln_ref, masks_ref,
                         o_ref):
    batch = o_ref.shape[1]
    cdt = wqkv_ref.dtype

    pos = pos_ref[...]                       # (B, D) f32
    lnv = ln_ref[...]                        # (12, D) f32
    hmask = masks_ref[0]                     # block-diagonal head mask (cdt)
    hrep = masks_ref[1]                      # R = J_H (x) I_dh (cdt)

    def block_params(blk):
        return (wqkv_ref[blk], wo_ref[blk], wffn1_ref[blk], wffn2_ref[blk],
                lnv[4 * blk + 0:4 * blk + 1, :],
                lnv[4 * blk + 1:4 * blk + 2, :],
                lnv[4 * blk + 2:4 * blk + 3, :],
                lnv[4 * blk + 3:4 * blk + 4, :])

    # ---- uu_block on user rows ----
    pu = ue_ref[...] + pos                   # sqrt(embed_dim) folded into table
    pu = _block(pu, pu, block_params(0), hmask, hrep, cdt, self_attn=True)

    # ---- ii_block on item rows ----
    qi = ie_ref[...] + pos
    qi = _block(qi, qi, block_params(1), hmask, hrep, cdt, self_attn=True)

    # ---- ui_block: attention(queries=item=Q_i, keys/values=user=P_u) ----
    qi = _block(qi, pu, block_params(2), hmask, hrep, cdt, self_attn=False)

    # ---- scores, written lane-dense as a (1, B) row ----
    scores_col = jnp.sum(pu * qi, axis=-1, keepdims=True)       # (B, 1)
    bi = lax.broadcasted_iota(jnp.int32, (batch, batch), 0)
    bj = lax.broadcasted_iota(jnp.int32, (batch, batch), 1)
    o_ref[...] = jnp.sum(jnp.where(bi == bj, scores_col, 0.0),
                         axis=0, keepdims=True)                 # (1, B)


# --------------------------------- wrapper ------------------------------------

def transformerf_forward(user, item, prepped):
    """Forward pass.  `prepped` comes from prepare_kernel_params()."""
    utbl = prepped["user_tbl"]
    itbl = prepped["item_tbl"]
    batch = user.shape[0]
    d = utbl.shape[1]
    assert batch <= prepped["pos"].shape[0], "batch must be <= pos max_len"

    # Embedding gather outside the kernel (one XLA gather per table) — replaces
    # the previous 2*B tiny in-kernel row DMAs / per-row semaphore waits.
    u_emb = jnp.take(utbl, user.astype(jnp.int32), axis=0)      # (B, D) f32
    i_emb = jnp.take(itbl, item.astype(jnp.int32), axis=0)      # (B, D) f32
    pos = prepped["pos"][:batch]                                # only B rows DMA'd

    w_qkv, w_o = prepped["w_qkv"], prepped["w_o"]
    w_ffn1, w_ffn2 = prepped["w_ffn1"], prepped["w_ffn2"]
    ln, masks = prepped["ln"], prepped["masks"]

    # NOTE: no batch tiling — the module's no-softmax attention couples all
    # batch rows (K^T V over the whole batch), so independent batch blocks
    # would change the results.  Single grid step, weights stay VMEM-resident.
    grid_spec = pltpu.PrefetchScalarGridSpec(
        num_scalar_prefetch=0,
        grid=(1,),
        in_specs=[
            pl.BlockSpec((batch, d), lambda i: (0, 0)),          # user rows
            pl.BlockSpec((batch, d), lambda i: (0, 0)),          # item rows
            pl.BlockSpec((batch, d), lambda i: (0, 0)),          # pos rows
            pl.BlockSpec(w_qkv.shape, lambda i: (0, 0, 0)),      # fused QKV
            pl.BlockSpec(w_o.shape, lambda i: (0, 0, 0)),
            pl.BlockSpec(w_ffn1.shape, lambda i: (0, 0, 0)),
            pl.BlockSpec(w_ffn2.shape, lambda i: (0, 0, 0)),
            pl.BlockSpec(ln.shape, lambda i: (0, 0)),
            pl.BlockSpec(masks.shape, lambda i: (0, 0, 0)),
        ],
        out_specs=pl.BlockSpec((1, batch), lambda i: (0, 0)),
    )

    out = pl.pallas_call(
        _transformerf_kernel,
        out_shape=jax.ShapeDtypeStruct((1, batch), jnp.float32),
        grid_spec=grid_spec,
        compiler_params=pltpu.CompilerParams(
            dimension_semantics=("arbitrary",)),
    )(u_emb, i_emb, pos, w_qkv, w_o, w_ffn1, w_ffn2, ln, masks)
    return out[0]


# ----------------------------- parameter handling -----------------------------

def _positional_encoding(max_len, embed_dim):
    x = (jnp.arange(max_len, dtype=jnp.float32).reshape(-1, 1)
         / jnp.power(10000.0,
                     jnp.arange(0, embed_dim, 2, dtype=jnp.float32) / embed_dim))
    p = jnp.zeros((max_len, embed_dim), jnp.float32)
    p = p.at[:, 0::2].set(jnp.sin(x))
    p = p.at[:, 1::2].set(jnp.cos(x))
    return p


def _init_block(key, embed_dim):
    ks = jax.random.split(key, 6)
    s = 0.1
    wq = jax.random.normal(ks[0], (embed_dim, embed_dim), jnp.float32) * s
    wk = jax.random.normal(ks[1], (embed_dim, embed_dim), jnp.float32) * s
    wv = jax.random.normal(ks[2], (embed_dim, embed_dim), jnp.float32) * s
    wo = jax.random.normal(ks[3], (embed_dim, embed_dim), jnp.float32) * s
    w1 = jax.random.normal(ks[4], (embed_dim, 2 * embed_dim), jnp.float32) * s
    w2 = jax.random.normal(ks[5], (2 * embed_dim, embed_dim), jnp.float32) * s
    g1 = jnp.ones((1, embed_dim), jnp.float32)
    b1 = jnp.zeros((1, embed_dim), jnp.float32)
    g2 = jnp.ones((1, embed_dim), jnp.float32)
    b2 = jnp.zeros((1, embed_dim), jnp.float32)
    return [wq, wk, wv, wo, w1, w2, g1, b1, g2, b2]


def init_params(key, n_users, m_items, embed_dim, max_len=2000):
    k_u, k_i, k_uu, k_ii, k_ui = jax.random.split(key, 5)
    return {
        "user_embed": jax.random.normal(k_u, (n_users, embed_dim), jnp.float32) * 0.01,
        "item_embed": jax.random.normal(k_i, (m_items, embed_dim), jnp.float32) * 0.01,
        "pos": _positional_encoding(max_len, embed_dim),
        "uu": _init_block(k_uu, embed_dim),
        "ii": _init_block(k_ii, embed_dim),
        "ui": _init_block(k_ui, embed_dim),
    }


def prepare_kernel_params(params, num_heads, compute_dtype=jnp.bfloat16):
    """One-time host-side packing into the slabs the kernel consumes.

    Folds sqrt(embed_dim) into the embedding tables and 1/sqrt(head_dim) into
    W_q (both linear, semantics preserved), fuses [Wq|Wk|Wv] into one (D, 3D)
    slab per block, precomputes the head masks, and stores all matmul operands
    in `compute_dtype` (bf16 = MXU-native on v5e/v6e/v7x; keep bf16 on v5e too,
    only its VPU/EUP lack bf16 — LayerNorm/residual math stays f32)."""
    d = params["user_embed"].shape[1]
    dh = d // num_heads
    sqrt_d = math.sqrt(d)
    inv_sqrt_dh = 1.0 / math.sqrt(dh)

    blocks = (params["uu"], params["ii"], params["ui"])

    w_qkv = jnp.stack(
        [jnp.concatenate([p[0] * inv_sqrt_dh, p[1], p[2]], axis=1) for p in blocks],
        axis=0)                                                     # (3, D, 3D)
    w_o = jnp.stack([p[3] for p in blocks], axis=0)                 # (3, D, D)
    w_ffn1 = jnp.stack([p[4] for p in blocks], axis=0)              # (3, D, 2D)
    w_ffn2 = jnp.stack([p[5] for p in blocks], axis=0)              # (3, 2D, D)
    ln = jnp.concatenate(
        [jnp.concatenate([p[6], p[7], p[8], p[9]], axis=0) for p in blocks],
        axis=0)                                                     # (12, D)

    # Precomputed 0/1 head masks (exact in bf16).
    ri = jnp.arange(d).reshape(d, 1)
    ci = jnp.arange(d).reshape(1, d)
    head_mask = ((ri // dh) == (ci // dh)).astype(jnp.float32)      # block-diagonal
    head_rep = ((ri % dh) == (ci % dh)).astype(jnp.float32)         # R = J_H (x) I_dh
    masks = jnp.stack([head_mask, head_rep], axis=0)                # (2, D, D)

    return {
        "user_tbl": (params["user_embed"] * sqrt_d).astype(jnp.float32),
        "item_tbl": (params["item_embed"] * sqrt_d).astype(jnp.float32),
        "pos": params["pos"].astype(jnp.float32),
        "w_qkv": w_qkv.astype(compute_dtype),
        "w_o": w_o.astype(compute_dtype),
        "w_ffn1": w_ffn1.astype(compute_dtype),
        "w_ffn2": w_ffn2.astype(compute_dtype),
        "ln": ln.astype(jnp.float32),
        "masks": masks.astype(compute_dtype),
    }


# ------------------------- plain-JAX reference (torch math) -------------------

def reference_forward(user, item, params, num_heads):
    d = params["user_embed"].shape[1]
    dh = d // num_heads

    def mha(xq, xkv, p):
        wq, wk, wv, wo = p[0], p[1], p[2], p[3]
        b = xq.shape[0]

        def tqkv(x):
            return x.reshape(b, num_heads, dh).reshape(b * num_heads, dh)

        q = tqkv(xq @ wq)
        k = tqkv(xkv @ wk)
        v = tqkv(xkv @ wv)
        attn = (q @ k.T) / math.sqrt(dh)          # (B*H, B*H), no softmax
        out = (attn @ v).reshape(b, num_heads, dh).reshape(b, d)
        return out @ wo

    def ln(x, g, b):
        mu = jnp.mean(x, -1, keepdims=True)
        var = jnp.mean((x - mu) ** 2, -1, keepdims=True)
        return (x - mu) / jnp.sqrt(var + _LN_EPS) * g + b

    def ffn(y, p):
        return jnp.maximum(y @ p[4], 0.0) @ p[5]

    def self_block(x, p):
        y = ln(mha(x, x, p) + x, p[6], p[7])
        return ln(ffn(y, p) + y, p[8], p[9])

    def cross_block(u, it, p):
        y = ln(mha(it, u, p) + it, p[6], p[7])
        return ln(ffn(y, p) + y, p[8], p[9])

    b = user.shape[0]
    pos = params["pos"][:b]
    pu = params["user_embed"][user] * math.sqrt(d) + pos
    qi = params["item_embed"][item] * math.sqrt(d) + pos
    pu = self_block(pu, params["uu"])
    qi = self_block(qi, params["ii"])
    qi = cross_block(pu, qi, params["ui"])
    return jnp.sum(pu * qi, axis=1)


# ------------------------------------ main ------------------------------------

if __name__ == "__main__":
    n_users, m_items = 20, 30
    embed_dim, num_heads = 32, 4      # embed_dim % num_heads == 0, head_dim = 8
    batch = 8
    max_len = 64

    root = jax.random.PRNGKey(0)
    k_params, k_user, k_item = jax.random.split(root, 3)
    params = init_params(k_params, n_users, m_items, embed_dim, max_len=max_len)

    user = jax.random.randint(k_user, (batch,), 0, n_users, dtype=jnp.int32)
    item = jax.random.randint(k_item, (batch,), 0, m_items, dtype=jnp.int32)

    fwd = jax.jit(transformerf_forward)

    # Faithful float32 reference (torch math).
    with jax.default_matmul_precision("highest"):
        ref = jax.block_until_ready(reference_forward(user, item, params, num_heads))

    # 1) f32-operand kernel path: tight correctness gate (identical code path).
    scores_f32 = jax.block_until_ready(
        fwd(user, item, prepare_kernel_params(params, num_heads, jnp.float32)))
    assert scores_f32.shape == (batch,), scores_f32.shape
    assert bool(jnp.all(jnp.isfinite(scores_f32)))
    err_f32 = float(jnp.max(jnp.abs(scores_f32 - ref)))
    assert err_f32 < 1e-2, f"f32 kernel mismatch vs reference: max abs err = {err_f32}"

    # 2) bf16-operand kernel path (MXU perf config, f32 accumulation inside the
    #    MXU): expected small precision loss -> relative gate; the f32 path
    #    above is the strict correctness check.
    scores_bf16 = jax.block_until_ready(
        fwd(user, item, prepare_kernel_params(params, num_heads, jnp.bfloat16)))
    assert scores_bf16.shape == (batch,), scores_bf16.shape
    assert bool(jnp.all(jnp.isfinite(scores_bf16)))
    scale = float(jnp.max(jnp.abs(ref))) + 1.0
    err_bf16 = float(jnp.max(jnp.abs(scores_bf16 - ref))) / scale
    assert err_bf16 < 1e-1, f"bf16 kernel mismatch vs reference: rel err = {err_bf16}"

    print("KERNEL_OK")
</pallas_src>

<mosaic_0001>
module attributes {stable_mosaic.version = 11 : i64} {
  func.func @_transformerf_kernel(%arg0: i32, %arg1: memref<8x32xf32, #tpu.memory_space<vmem>>, %arg2: memref<8x32xf32, #tpu.memory_space<vmem>>, %arg3: memref<8x32xf32, #tpu.memory_space<vmem>>, %arg4: memref<3x32x96xf32, #tpu.memory_space<vmem>>, %arg5: memref<3x32x32xf32, #tpu.memory_space<vmem>>, %arg6: memref<3x32x64xf32, #tpu.memory_space<vmem>>, %arg7: memref<3x64x32xf32, #tpu.memory_space<vmem>>, %arg8: memref<12x32xf32, #tpu.memory_space<vmem>>, %arg9: memref<2x32x32xf32, #tpu.memory_space<vmem>>, %arg10: memref<1x8xf32, #tpu.memory_space<vmem>>) attributes {dimension_semantics = [#tpu.dimension_semantics<arbitrary>], iteration_bounds = array<i64: 1>, scalar_prefetch = 0 : i64, scratch_operands = 0 : i64, tpu.core_type = #tpu.core_type<tc>, window_params = [{pipeline_mode = #tpu.pipeline_mode<synchronous>, transform_indices = @transform_0, window_bounds = array<i64: 8, 32>}, {pipeline_mode = #tpu.pipeline_mode<synchronous>, transform_indices = @transform_1, window_bounds = array<i64: 8, 32>}, {pipeline_mode = #tpu.pipeline_mode<synchronous>, transform_indices = @transform_2, window_bounds = array<i64: 8, 32>}, {pipeline_mode = #tpu.pipeline_mode<synchronous>, transform_indices = @transform_3, window_bounds = array<i64: 3, 32, 96>}, {pipeline_mode = #tpu.pipeline_mode<synchronous>, transform_indices = @transform_4, window_bounds = array<i64: 3, 32, 32>}, {pipeline_mode = #tpu.pipeline_mode<synchronous>, transform_indices = @transform_5, window_bounds = array<i64: 3, 32, 64>}, {pipeline_mode = #tpu.pipeline_mode<synchronous>, transform_indices = @transform_6, window_bounds = array<i64: 3, 64, 32>}, {pipeline_mode = #tpu.pipeline_mode<synchronous>, transform_indices = @transform_7, window_bounds = array<i64: 12, 32>}, {pipeline_mode = #tpu.pipeline_mode<synchronous>, transform_indices = @transform_8, window_bounds = array<i64: 2, 32, 32>}, {pipeline_mode = #tpu.pipeline_mode<synchronous>, transform_indices = @transform_9, window_bounds = array<i64: 1, 8>}]} {
    %c0 = arith.constant 0 : index
    %c0_0 = arith.constant 0 : index
    %0 = vector.load %arg3[%c0, %c0_0] : memref<8x32xf32, #tpu.memory_space<vmem>>, vector<8x32xf32>
    %c0_1 = arith.constant 0 : index
    %c0_2 = arith.constant 0 : index
    %1 = vector.load %arg8[%c0_1, %c0_2] : memref<12x32xf32, #tpu.memory_space<vmem>>, vector<12x32xf32>
    %c0_3 = arith.constant 0 : index
    %c0_4 = arith.constant 0 : index
    %c0_5 = arith.constant 0 : index
    %2 = vector.load %arg9[%c0_3, %c0_4, %c0_5] : memref<2x32x32xf32, #tpu.memory_space<vmem>>, vector<1x32x32xf32>
    %3 = vector.shape_cast %2 : vector<1x32x32xf32> to vector<32x32xf32>
    %c1 = arith.constant 1 : index
    %c0_6 = arith.constant 0 : index
    %c0_7 = arith.constant 0 : index
    %4 = vector.load %arg9[%c1, %c0_6, %c0_7] : memref<2x32x32xf32, #tpu.memory_space<vmem>>, vector<1x32x32xf32>
    %5 = vector.shape_cast %4 : vector<1x32x32xf32> to vector<32x32xf32>
    %c0_8 = arith.constant 0 : index
    %c0_9 = arith.constant 0 : index
    %6 = vector.load %arg1[%c0_8, %c0_9] : memref<8x32xf32, #tpu.memory_space<vmem>>, vector<8x32xf32>
    %7 = arith.addf %6, %0 : vector<8x32xf32>
    %c0_10 = arith.constant 0 : index
    %c0_11 = arith.constant 0 : index
    %c0_12 = arith.constant 0 : index
    %8 = vector.load %arg4[%c0_10, %c0_11, %c0_12] : memref<3x32x96xf32, #tpu.memory_space<vmem>>, vector<1x32x96xf32>
    %9 = vector.shape_cast %8 : vector<1x32x96xf32> to vector<32x96xf32>
    %c0_13 = arith.constant 0 : index
    %c0_14 = arith.constant 0 : index
    %c0_15 = arith.constant 0 : index
    %10 = vector.load %arg5[%c0_13, %c0_14, %c0_15] : memref<3x32x32xf32, #tpu.memory_space<vmem>>, vector<1x32x32xf32>
    %11 = vector.shape_cast %10 : vector<1x32x32xf32> to vector<32x32xf32>
    %c0_16 = arith.constant 0 : index
    %c0_17 = arith.constant 0 : index
    %c0_18 = arith.constant 0 : index
    %12 = vector.load %arg6[%c0_16, %c0_17, %c0_18] : memref<3x32x64xf32, #tpu.memory_space<vmem>>, vector<1x32x64xf32>
    %13 = vector.shape_cast %12 : vector<1x32x64xf32> to vector<32x64xf32>
    %c0_19 = arith.constant 0 : index
    %c0_20 = arith.constant 0 : index
    %c0_21 = arith.constant 0 : index
    %14 = vector.load %arg7[%c0_19, %c0_20, %c0_21] : memref<3x64x32xf32, #tpu.memory_space<vmem>>, vector<1x64x32xf32>
    %15 = vector.shape_cast %14 : vector<1x64x32xf32> to vector<64x32xf32>
    %16 = vector.extract_strided_slice %1 {offsets = [0, 0], sizes = [1, 32], strides = [1, 1]} : vector<12x32xf32> to vector<1x32xf32>
    %17 = vector.extract_strided_slice %1 {offsets = [1, 0], sizes = [1, 32], strides = [1, 1]} : vector<12x32xf32> to vector<1x32xf32>
    %18 = vector.extract_strided_slice %1 {offsets = [2, 0], sizes = [1, 32], strides = [1, 1]} : vector<12x32xf32> to vector<1x32xf32>
    %19 = vector.extract_strided_slice %1 {offsets = [3, 0], sizes = [1, 32], strides = [1, 1]} : vector<12x32xf32> to vector<1x32xf32>
    %cst = arith.constant dense<0.000000e+00> : vector<8x96xf32>
    %20 = tpu.matmul %7, %9, %cst {dimension_numbers = #tpu.dot_dimension_numbers<[1], [0], [0], [1], [0, 0, 1, 1], [], []>} : vector<8x32xf32>, vector<32x96xf32>, vector<8x96xf32> -> vector<8x96xf32>
    %21 = vector.extract_strided_slice %20 {offsets = [0, 0], sizes = [8, 32], strides = [1, 1]} : vector<8x96xf32> to vector<8x32xf32>
    %22 = vector.extract_strided_slice %20 {offsets = [0, 32], sizes = [8, 32], strides = [1, 1]} : vector<8x96xf32> to vector<8x32xf32>
    %23 = vector.extract_strided_slice %20 {offsets = [0, 64], sizes = [8, 32], strides = [1, 1]} : vector<8x96xf32> to vector<8x32xf32>
    %cst_22 = arith.constant dense<0.000000e+00> : vector<32x32xf32>
    %24 = tpu.matmul %22, %23, %cst_22 {dimension_numbers = #tpu.dot_dimension_numbers<[0], [0], [1], [1], [0, 1, 1, 1], [], []>} : vector<8x32xf32>, vector<8x32xf32>, vector<32x32xf32> -> vector<32x32xf32>
    %25 = arith.mulf %24, %3 : vector<32x32xf32>
    %cst_23 = arith.constant dense<0.000000e+00> : vector<32x32xf32>
    %26 = tpu.matmul %5, %25, %cst_23 {dimension_numbers = #tpu.dot_dimension_numbers<[1], [0], [0], [1], [0, 0, 1, 1], [], []>} : vector<32x32xf32>, vector<32x32xf32>, vector<32x32xf32> -> vector<32x32xf32>
    %cst_24 = arith.constant dense<0.000000e+00> : vector<32x32xf32>
    %27 = tpu.matmul %26, %5, %cst_24 {dimension_numbers = #tpu.dot_dimension_numbers<[1], [0], [0], [1], [0, 0, 1, 1], [], []>} : vector<32x32xf32>, vector<32x32xf32>, vector<32x32xf32> -> vector<32x32xf32>
    %28 = arith.mulf %27, %3 : vector<32x32xf32>
    %cst_25 = arith.constant dense<0.000000e+00> : vector<32x32xf32>
    %29 = tpu.matmul %28, %11, %cst_25 {dimension_numbers = #tpu.dot_dimension_numbers<[1], [0], [0], [1], [0, 0, 1, 1], [], []>} : vector<32x32xf32>, vector<32x32xf32>, vector<32x32xf32> -> vector<32x32xf32>
    %cst_26 = arith.constant dense<0.000000e+00> : vector<8x32xf32>
    %30 = tpu.matmul %21, %29, %cst_26 {dimension_numbers = #tpu.dot_dimension_numbers<[1], [0], [0], [1], [0, 0, 1, 1], [], []>} : vector<8x32xf32>, vector<32x32xf32>, vector<8x32xf32> -> vector<8x32xf32>
    %31 = arith.addf %30, %7 : vector<8x32xf32>
    %cst_27 = arith.constant dense<0.000000e+00> : vector<8xf32>
    %32 = vector.multi_reduction <add>, %31, %cst_27 [1] : vector<8x32xf32> to vector<8xf32>
    %33 = vector.shape_cast %32 : vector<8xf32> to vector<8x1xf32>
    %cst_28 = arith.constant 3.200000e+01 : f32
    %34 = vector.broadcast %cst_28 : f32 to vector<8x1xf32>
    %35 = arith.divf %33, %34 : vector<8x1xf32>
    %36 = vector.broadcast %35 : vector<8x1xf32> to vector<8x32xf32>
    %37 = arith.subf %31, %36 : vector<8x32xf32>
    %38 = arith.mulf %37, %37 : vector<8x32xf32>
    %cst_29 = arith.constant dense<0.000000e+00> : vector<8xf32>
    %39 = vector.multi_reduction <add>, %38, %cst_29 [1] : vector<8x32xf32> to vector<8xf32>
    %40 = vector.shape_cast %39 : vector<8xf32> to vector<8x1xf32>
    %cst_30 = arith.constant 3.200000e+01 : f32
    %41 = vector.broadcast %cst_30 : f32 to vector<8x1xf32>
    %42 = arith.divf %40, %41 : vector<8x1xf32>
    %43 = vector.broadcast %35 : vector<8x1xf32> to vector<8x32xf32>
    %44 = arith.subf %31, %43 : vector<8x32xf32>
    %cst_31 = arith.constant 9.99999974E-6 : f32
    %45 = vector.broadcast %cst_31 : f32 to vector<8x1xf32>
    %46 = arith.addf %42, %45 : vector<8x1xf32>
    %47 = math.rsqrt %46 : vector<8x1xf32>
    %48 = vector.broadcast %47 : vector<8x1xf32> to vector<8x32xf32>
    %49 = arith.mulf %44, %48 : vector<8x32xf32>
    %50 = vector.broadcast %16 : vector<1x32xf32> to vector<8x32xf32>
    %51 = arith.mulf %49, %50 : vector<8x32xf32>
    %52 = vector.broadcast %17 : vector<1x32xf32> to vector<8x32xf32>
    %53 = arith.addf %51, %52 : vector<8x32xf32>
    %cst_32 = arith.constant dense<0.000000e+00> : vector<8x64xf32>
    %54 = tpu.matmul %53, %13, %cst_32 {dimension_numbers = #tpu.dot_dimension_numbers<[1], [0], [0], [1], [0, 0, 1, 1], [], []>} : vector<8x32xf32>, vector<32x64xf32>, vector<8x64xf32> -> vector<8x64xf32>
    %cst_33 = arith.constant 0.000000e+00 : f32
    %55 = vector.broadcast %cst_33 : f32 to vector<8x64xf32>
    %56 = arith.maximumf %54, %55 : vector<8x64xf32>
    %cst_34 = arith.constant dense<0.000000e+00> : vector<8x32xf32>
    %57 = tpu.matmul %56, %15, %cst_34 {dimension_numbers = #tpu.dot_dimension_numbers<[1], [0], [0], [1], [0, 0, 1, 1], [], []>} : vector<8x64xf32>, vector<64x32xf32>, vector<8x32xf32> -> vector<8x32xf32>
    %58 = arith.addf %57, %53 : vector<8x32xf32>
    %cst_35 = arith.constant dense<0.000000e+00> : vector<8xf32>
    %59 = vector.multi_reduction <add>, %58, %cst_35 [1] : vector<8x32xf32> to vector<8xf32>
    %60 = vector.shape_cast %59 : vector<8xf32> to vector<8x1xf32>
    %cst_36 = arith.constant 3.200000e+01 : f32
    %61 = vector.broadcast %cst_36 : f32 to vector<8x1xf32>
    %62 = arith.divf %60, %61 : vector<8x1xf32>
    %63 = vector.broadcast %62 : vector<8x1xf32> to vector<8x32xf32>
    %64 = arith.subf %58, %63 : vector<8x32xf32>
    %65 = arith.mulf %64, %64 : vector<8x32xf32>
    %cst_37 = arith.constant dense<0.000000e+00> : vector<8xf32>
    %66 = vector.multi_reduction <add>, %65, %cst_37 [1] : vector<8x32xf32> to vector<8xf32>
    %67 = vector.shape_cast %66 : vector<8xf32> to vector<8x1xf32>
    %cst_38 = arith.constant 3.200000e+01 : f32
    %68 = vector.broadcast %cst_38 : f32 to vector<8x1xf32>
    %69 = arith.divf %67, %68 : vector<8x1xf32>
    %70 = vector.broadcast %62 : vector<8x1xf32> to vector<8x32xf32>
    %71 = arith.subf %58, %70 : vector<8x32xf32>
    %cst_39 = arith.constant 9.99999974E-6 : f32
    %72 = vector.broadcast %cst_39 : f32 to vector<8x1xf32>
    %73 = arith.addf %69, %72 : vector<8x1xf32>
    %74 = math.rsqrt %73 : vector<8x1xf32>
    %75 = vector.broadcast %74 : vector<8x1xf32> to vector<8x32xf32>
    %76 = arith.mulf %71, %75 : vector<8x32xf32>
    %77 = vector.broadcast %18 : vector<1x32xf32> to vector<8x32xf32>
    %78 = arith.mulf %76, %77 : vector<8x32xf32>
    %79 = vector.broadcast %19 : vector<1x32xf32> to vector<8x32xf32>
    %80 = arith.addf %78, %79 : vector<8x32xf32>
    %c0_40 = arith.constant 0 : index
    %c0_41 = arith.constant 0 : index
    %81 = vector.load %arg2[%c0_40, %c0_41] : memref<8x32xf32, #tpu.memory_space<vmem>>, vector<8x32xf32>
    %82 = arith.addf %81, %0 : vector<8x32xf32>
    %c1_42 = arith.constant 1 : index
    %c0_43 = arith.constant 0 : index
    %c0_44 = arith.constant 0 : index
    %83 = vector.load %arg4[%c1_42, %c0_43, %c0_44] : memref<3x32x96xf32, #tpu.memory_space<vmem>>, vector<1x32x96xf32>
    %84 = vector.shape_cast %83 : vector<1x32x96xf32> to vector<32x96xf32>
    %c1_45 = arith.constant 1 : index
    %c0_46 = arith.constant 0 : index
    %c0_47 = arith.constant 0 : index
    %85 = vector.load %arg5[%c1_45, %c0_46, %c0_47] : memref<3x32x32xf32, #tpu.memory_space<vmem>>, vector<1x32x32xf32>
    %86 = vector.shape_cast %85 : vector<1x32x32xf32> to vector<32x32xf32>
    %c1_48 = arith.constant 1 : index
    %c0_49 = arith.constant 0 : index
    %c0_50 = arith.constant 0 : index
    %87 = vector.load %arg6[%c1_48, %c0_49, %c0_50] : memref<3x32x64xf32, #tpu.memory_space<vmem>>, vector<1x32x64xf32>
    %88 = vector.shape_cast %87 : vector<1x32x64xf32> to vector<32x64xf32>
    %c1_51 = arith.constant 1 : index
    %c0_52 = arith.constant 0 : index
    %c0_53 = arith.constant 0 : index
    %89 = vector.load %arg7[%c1_51, %c0_52, %c0_53] : memref<3x64x32xf32, #tpu.memory_space<vmem>>, vector<1x64x32xf32>
    %90 = vector.shape_cast %89 : vector<1x64x32xf32> to vector<64x32xf32>
    %91 = vector.extract_strided_slice %1 {offsets = [4, 0], sizes = [1, 32], strides = [1, 1]} : vector<12x32xf32> to vector<1x32xf32>
    %92 = vector.extract_strided_slice %1 {offsets = [5, 0], sizes = [1, 32], strides = [1, 1]} : vector<12x32xf32> to vector<1x32xf32>
    %93 = vector.extract_strided_slice %1 {offsets = [6, 0], sizes = [1, 32], strides = [1, 1]} : vector<12x32xf32> to vector<1x32xf32>
    %94 = vector.extract_strided_slice %1 {offsets = [7, 0], sizes = [1, 32], strides = [1, 1]} : vector<12x32xf32> to vector<1x32xf32>
    %cst_54 = arith.constant dense<0.000000e+00> : vector<8x96xf32>
    %95 = tpu.matmul %82, %84, %cst_54 {dimension_numbers = #tpu.dot_dimension_numbers<[1], [0], [0], [1], [0, 0, 1, 1], [], []>} : vector<8x32xf32>, vector<32x96xf32>, vector<8x96xf32> -> vector<8x96xf32>
    %96 = vector.extract_strided_slice %95 {offsets = [0, 0], sizes = [8, 32], strides = [1, 1]} : vector<8x96xf32> to vector<8x32xf32>
    %97 = vector.extract_strided_slice %95 {offsets = [0, 32], sizes = [8, 32], strides = [1, 1]} : vector<8x96xf32> to vector<8x32xf32>
    %98 = vector.extract_strided_slice %95 {offsets = [0, 64], sizes = [8, 32], strides = [1, 1]} : vector<8x96xf32> to vector<8x32xf32>
    %cst_55 = arith.constant dense<0.000000e+00> : vector<32x32xf32>
    %99 = tpu.matmul %97, %98, %cst_55 {dimension_numbers = #tpu.dot_dimension_numbers<[0], [0], [1], [1], [0, 1, 1, 1], [], []>} : vector<8x32xf32>, vector<8x32xf32>, vector<32x32xf32> -> vector<32x32xf32>
    %100 = arith.mulf %99, %3 : vector<32x32xf32>
    %cst_56 = arith.constant dense<0.000000e+00> : vector<32x32xf32>
    %101 = tpu.matmul %5, %100, %cst_56 {dimension_numbers = #tpu.dot_dimension_numbers<[1], [0], [0], [1], [0, 0, 1, 1], [], []>} : vector<32x32xf32>, vector<32x32xf32>, vector<32x32xf32> -> vector<32x32xf32>
    %cst_57 = arith.constant dense<0.000000e+00> : vector<32x32xf32>
    %102 = tpu.matmul %101, %5, %cst_57 {dimension_numbers = #tpu.dot_dimension_numbers<[1], [0], [0], [1], [0, 0, 1, 1], [], []>} : vector<32x32xf32>, vector<32x32xf32>, vector<32x32xf32> -> vector<32x32xf32>
    %103 = arith.mulf %102, %3 : vector<32x32xf32>
    %cst_58 = arith.constant dense<0.000000e+00> : vector<32x32xf32>
    %104 = tpu.matmul %103, %86, %cst_58 {dimension_numbers = #tpu.dot_dimension_numbers<[1], [0], [0], [1], [0, 0, 1, 1], [], []>} : vector<32x32xf32>, vector<32x32xf32>, vector<32x32xf32> -> vector<32x32xf32>
    %cst_59 = arith.constant dense<0.000000e+00> : vector<8x32xf32>
    %105 = tpu.matmul %96, %104, %cst_59 {dimension_numbers = #tpu.dot_dimension_numbers<[1], [0], [0], [1], [0, 0, 1, 1], [], []>} : vector<8x32xf32>, vector<32x32xf32>, vector<8x32xf32> -> vector<8x32xf32>
    %106 = arith.addf %105, %82 : vector<8x32xf32>
    %cst_60 = arith.constant dense<0.000000e+00> : vector<8xf32>
    %107 = vector.multi_reduction <add>, %106, %cst_60 [1] : vector<8x32xf32> to vector<8xf32>
    %108 = vector.shape_cast %107 : vector<8xf32> to vector<8x1xf32>
    %cst_61 = arith.constant 3.200000e+01 : f32
    %109 = vector.broadcast %cst_61 : f32 to vector<8x1xf32>
    %110 = arith.divf %108, %109 : vector<8x1xf32>
    %111 = vector.broadcast %110 : vector<8x1xf32> to vector<8x32xf32>
    %112 = arith.subf %106, %111 : vector<8x32xf32>
    %113 = arith.mulf %112, %112 : vector<8x32xf32>
    %cst_62 = arith.constant dense<0.000000e+00> : vector<8xf32>
    %114 = vector.multi_reduction <add>, %113, %cst_62 [1] : vector<8x32xf32> to vector<8xf32>
    %115 = vector.shape_cast %114 : vector<8xf32> to vector<8x1xf32>
    %cst_63 = arith.constant 3.200000e+01 : f32
    %116 = vector.broadcast %cst_63 : f32 to vector<8x1xf32>
    %117 = arith.divf %115, %116 : vector<8x1xf32>
    %118 = vector.broadcast %110 : vector<8x1xf32> to vector<8x32xf32>
    %119 = arith.subf %106, %118 : vector<8x32xf32>
    %cst_64 = arith.constant 9.99999974E-6 : f32
    %120 = vector.broadcast %cst_64 : f32 to vector<8x1xf32>
    %121 = arith.addf %117, %120 : vector<8x1xf32>
    %122 = math.rsqrt %121 : vector<8x1xf32>
    %123 = vector.broadcast %122 : vector<8x1xf32> to vector<8x32xf32>
    %124 = arith.mulf %119, %123 : vector<8x32xf32>
    %125 = vector.broadcast %91 : vector<1x32xf32> to vector<8x32xf32>
    %126 = arith.mulf %124, %125 : vector<8x32xf32>
    %127 = vector.broadcast %92 : vector<1x32xf32> to vector<8x32xf32>
    %128 = arith.addf %126, %127 : vector<8x32xf32>
    %cst_65 = arith.constant dense<0.000000e+00> : vector<8x64xf32>
    %129 = tpu.matmul %128, %88, %cst_65 {dimension_numbers = #tpu.dot_dimension_numbers<[1], [0], [0], [1], [0, 0, 1, 1], [], []>} : vector<8x32xf32>, vector<32x64xf32>, vector<8x64xf32> -> vector<8x64xf32>
    %cst_66 = arith.constant 0.000000e+00 : f32
    %130 = vector.broadcast %cst_66 : f32 to vector<8x64xf32>
    %131 = arith.maximumf %129, %130 : vector<8x64xf32>
    %cst_67 = arith.constant dense<0.000000e+00> : vector<8x32xf32>
    %132 = tpu.matmul %131, %90, %cst_67 {dimension_numbers = #tpu.dot_dimension_numbers<[1], [0], [0], [1], [0, 0, 1, 1], [], []>} : vector<8x64xf32>, vector<64x32xf32>, vector<8x32xf32> -> vector<8x32xf32>
    %133 = arith.addf %132, %128 : vector<8x32xf32>
    %cst_68 = arith.constant dense<0.000000e+00> : vector<8xf32>
    %134 = vector.multi_reduction <add>, %133, %cst_68 [1] : vector<8x32xf32> to vector<8xf32>
    %135 = vector.shape_cast %134 : vector<8xf32> to vector<8x1xf32>
    %cst_69 = arith.constant 3.200000e+01 : f32
    %136 = vector.broadcast %cst_69 : f32 to vector<8x1xf32>
    %137 = arith.divf %135, %136 : vector<8x1xf32>
    %138 = vector.broadcast %137 : vector<8x1xf32> to vector<8x32xf32>
    %139 = arith.subf %133, %138 : vector<8x32xf32>
    %140 = arith.mulf %139, %139 : vector<8x32xf32>
    %cst_70 = arith.constant dense<0.000000e+00> : vector<8xf32>
    %141 = vector.multi_reduction <add>, %140, %cst_70 [1] : vector<8x32xf32> to vector<8xf32>
    %142 = vector.shape_cast %141 : vector<8xf32> to vector<8x1xf32>
    %cst_71 = arith.constant 3.200000e+01 : f32
    %143 = vector.broadcast %cst_71 : f32 to vector<8x1xf32>
    %144 = arith.divf %142, %143 : vector<8x1xf32>
    %145 = vector.broadcast %137 : vector<8x1xf32> to vector<8x32xf32>
    %146 = arith.subf %133, %145 : vector<8x32xf32>
    %cst_72 = arith.constant 9.99999974E-6 : f32
    %147 = vector.broadcast %cst_72 : f32 to vector<8x1xf32>
    %148 = arith.addf %144, %147 : vector<8x1xf32>
    %149 = math.rsqrt %148 : vector<8x1xf32>
    %150 = vector.broadcast %149 : vector<8x1xf32> to vector<8x32xf32>
    %151 = arith.mulf %146, %150 : vector<8x32xf32>
    %152 = vector.broadcast %93 : vector<1x32xf32> to vector<8x32xf32>
    %153 = arith.mulf %151, %152 : vector<8x32xf32>
    %154 = vector.broadcast %94 : vector<1x32xf32> to vector<8x32xf32>
    %155 = arith.addf %153, %154 : vector<8x32xf32>
    %c2 = arith.constant 2 : index
    %c0_73 = arith.constant 0 : index
    %c0_74 = arith.constant 0 : index
    %156 = vector.load %arg4[%c2, %c0_73, %c0_74] : memref<3x32x96xf32, #tpu.memory_space<vmem>>, vector<1x32x96xf32>
    %157 = vector.shape_cast %156 : vector<1x32x96xf32> to vector<32x96xf32>
    %c2_75 = arith.constant 2 : index
    %c0_76 = arith.constant 0 : index
    %c0_77 = arith.constant 0 : index
    %158 = vector.load %arg5[%c2_75, %c0_76, %c0_77] : memref<3x32x32xf32, #tpu.memory_space<vmem>>, vector<1x32x32xf32>
    %159 = vector.shape_cast %158 : vector<1x32x32xf32> to vector<32x32xf32>
    %c2_78 = arith.constant 2 : index
    %c0_79 = arith.constant 0 : index
    %c0_80 = arith.constant 0 : index
    %160 = vector.load %arg6[%c2_78, %c0_79, %c0_80] : memref<3x32x64xf32, #tpu.memory_space<vmem>>, vector<1x32x64xf32>
    %161 = vector.shape_cast %160 : vector<1x32x64xf32> to vector<32x64xf32>
    %c2_81 = arith.constant 2 : index
    %c0_82 = arith.constant 0 : index
    %c0_83 = arith.constant 0 : index
    %162 = vector.load %arg7[%c2_81, %c0_82, %c0_83] : memref<3x64x32xf32, #tpu.memory_space<vmem>>, vector<1x64x32xf32>
    %163 = vector.shape_cast %162 : vector<1x64x32xf32> to vector<64x32xf32>
    %164 = vector.extract_strided_slice %1 {offsets = [8, 0], sizes = [1, 32], strides = [1, 1]} : vector<12x32xf32> to vector<1x32xf32>
    %165 = vector.extract_strided_slice %1 {offsets = [9, 0], sizes = [1, 32], strides = [1, 1]} : vector<12x32xf32> to vector<1x32xf32>
    %166 = vector.extract_strided_slice %1 {offsets = [10, 0], sizes = [1, 32], strides = [1, 1]} : vector<12x32xf32> to vector<1x32xf32>
    %167 = vector.extract_strided_slice %1 {offsets = [11, 0], sizes = [1, 32], strides = [1, 1]} : vector<12x32xf32> to vector<1x32xf32>
    %168 = vector.extract_strided_slice %157 {offsets = [0, 0], sizes = [32, 32], strides = [1, 1]} : vector<32x96xf32> to vector<32x32xf32>
    %cst_84 = arith.constant dense<0.000000e+00> : vector<8x32xf32>
    %169 = tpu.matmul %155, %168, %cst_84 {dimension_numbers = #tpu.dot_dimension_numbers<[1], [0], [0], [1], [0, 0, 1, 1], [], []>} : vector<8x32xf32>, vector<32x32xf32>, vector<8x32xf32> -> vector<8x32xf32>
    %170 = vector.extract_strided_slice %157 {offsets = [0, 32], sizes = [32, 64], strides = [1, 1]} : vector<32x96xf32> to vector<32x64xf32>
    %cst_85 = arith.constant dense<0.000000e+00> : vector<8x64xf32>
    %171 = tpu.matmul %80, %170, %cst_85 {dimension_numbers = #tpu.dot_dimension_numbers<[1], [0], [0], [1], [0, 0, 1, 1], [], []>} : vector<8x32xf32>, vector<32x64xf32>, vector<8x64xf32> -> vector<8x64xf32>
    %172 = vector.extract_strided_slice %171 {offsets = [0, 0], sizes = [8, 32], strides = [1, 1]} : vector<8x64xf32> to vector<8x32xf32>
    %173 = vector.extract_strided_slice %171 {offsets = [0, 32], sizes = [8, 32], strides = [1, 1]} : vector<8x64xf32> to vector<8x32xf32>
    %cst_86 = arith.constant dense<0.000000e+00> : vector<32x32xf32>
    %174 = tpu.matmul %172, %173, %cst_86 {dimension_numbers = #tpu.dot_dimension_numbers<[0], [0], [1], [1], [0, 1, 1, 1], [], []>} : vector<8x32xf32>, vector<8x32xf32>, vector<32x32xf32> -> vector<32x32xf32>
    %175 = arith.mulf %174, %3 : vector<32x32xf32>
    %cst_87 = arith.constant dense<0.000000e+00> : vector<32x32xf32>
    %176 = tpu.matmul %5, %175, %cst_87 {dimension_numbers = #tpu.dot_dimension_numbers<[1], [0], [0], [1], [0, 0, 1, 1], [], []>} : vector<32x32xf32>, vector<32x32xf32>, vector<32x32xf32> -> vector<32x32xf32>
    %cst_88 = arith.constant dense<0.000000e+00> : vector<32x32xf32>
    %177 = tpu.matmul %176, %5, %cst_88 {dimension_numbers = #tpu.dot_dimension_numbers<[1], [0], [0], [1], [0, 0, 1, 1], [], []>} : vector<32x32xf32>, vector<32x32xf32>, vector<32x32xf32> -> vector<32x32xf32>
    %178 = arith.mulf %177, %3 : vector<32x32xf32>
    %cst_89 = arith.constant dense<0.000000e+00> : vector<32x32xf32>
    %179 = tpu.matmul %178, %159, %cst_89 {dimension_numbers = #tpu.dot_dimension_numbers<[1], [0], [0], [1], [0, 0, 1, 1], [], []>} : vector<32x32xf32>, vector<32x32xf32>, vector<32x32xf32> -> vector<32x32xf32>
    %cst_90 = arith.constant dense<0.000000e+00> : vector<8x32xf32>
    %180 = tpu.matmul %169, %179, %cst_90 {dimension_numbers = #tpu.dot_dimension_numbers<[1], [0], [0], [1], [0, 0, 1, 1], [], []>} : vector<8x32xf32>, vector<32x32xf32>, vector<8x32xf32> -> vector<8x32xf32>
    %181 = arith.addf %180, %155 : vector<8x32xf32>
    %cst_91 = arith.constant dense<0.000000e+00> : vector<8xf32>
    %182 = vector.multi_reduction <add>, %181, %cst_91 [1] : vector<8x32xf32> to vector<8xf32>
    %183 = vector.shape_cast %182 : vector<8xf32> to vector<8x1xf32>
    %cst_92 = arith.constant 3.200000e+01 : f32
    %184 = vector.broadcast %cst_92 : f32 to vector<8x1xf32>
    %185 = arith.divf %183, %184 : vector<8x1xf32>
    %186 = vector.broadcast %185 : vector<8x1xf32> to vector<8x32xf32>
    %187 = arith.subf %181, %186 : vector<8x32xf32>
    %188 = arith.mulf %187, %187 : vector<8x32xf32>
    %cst_93 = arith.constant dense<0.000000e+00> : vector<8xf32>
    %189 = vector.multi_reduction <add>, %188, %cst_93 [1] : vector<8x32xf32> to vector<8xf32>
    %190 = vector.shape_cast %189 : vector<8xf32> to vector<8x1xf32>
    %cst_94 = arith.constant 3.200000e+01 : f32
    %191 = vector.broadcast %cst_94 : f32 to vector<8x1xf32>
    %192 = arith.divf %190, %191 : vector<8x1xf32>
    %193 = vector.broadcast %185 : vector<8x1xf32> to vector<8x32xf32>
    %194 = arith.subf %181, %193 : vector<8x32xf32>
    %cst_95 = arith.constant 9.99999974E-6 : f32
    %195 = vector.broadcast %cst_95 : f32 to vector<8x1xf32>
    %196 = arith.addf %192, %195 : vector<8x1xf32>
    %197 = math.rsqrt %196 : vector<8x1xf32>
    %198 = vector.broadcast %197 : vector<8x1xf32> to vector<8x32xf32>
    %199 = arith.mulf %194, %198 : vector<8x32xf32>
    %200 = vector.broadcast %164 : vector<1x32xf32> to vector<8x32xf32>
    %201 = arith.mulf %199, %200 : vector<8x32xf32>
    %202 = vector.broadcast %165 : vector<1x32xf32> to vector<8x32xf32>
    %203 = arith.addf %201, %202 : vector<8x32xf32>
    %cst_96 = arith.constant dense<0.000000e+00> : vector<8x64xf32>
    %204 = tpu.matmul %203, %161, %cst_96 {dimension_numbers = #tpu.dot_dimension_numbers<[1], [0], [0], [1], [0, 0, 1, 1], [], []>} : vector<8x32xf32>, vector<32x64xf32>, vector<8x64xf32> -> vector<8x64xf32>
    %cst_97 = arith.constant 0.000000e+00 : f32
    %205 = vector.broadcast %cst_97 : f32 to vector<8x64xf32>
    %206 = arith.maximumf %204, %205 : vector<8x64xf32>
    %cst_98 = arith.constant dense<0.000000e+00> : vector<8x32xf32>
    %207 = tpu.matmul %206, %163, %cst_98 {dimension_numbers = #tpu.dot_dimension_numbers<[1], [0], [0], [1], [0, 0, 1, 1], [], []>} : vector<8x64xf32>, vector<64x32xf32>, vector<8x32xf32> -> vector<8x32xf32>
    %208 = arith.addf %207, %203 : vector<8x32xf32>
    %cst_99 = arith.constant dense<0.000000e+00> : vector<8xf32>
    %209 = vector.multi_reduction <add>, %208, %cst_99 [1] : vector<8x32xf32> to vector<8xf32>
    %210 = vector.shape_cast %209 : vector<8xf32> to vector<8x1xf32>
    %cst_100 = arith.constant 3.200000e+01 : f32
    %211 = vector.broadcast %cst_100 : f32 to vector<8x1xf32>
    %212 = arith.divf %210, %211 : vector<8x1xf32>
    %213 = vector.broadcast %212 : vector<8x1xf32> to vector<8x32xf32>
    %214 = arith.subf %208, %213 : vector<8x32xf32>
    %215 = arith.mulf %214, %214 : vector<8x32xf32>
    %cst_101 = arith.constant dense<0.000000e+00> : vector<8xf32>
    %216 = vector.multi_reduction <add>, %215, %cst_101 [1] : vector<8x32xf32> to vector<8xf32>
    %217 = vector.shape_cast %216 : vector<8xf32> to vector<8x1xf32>
    %cst_102 = arith.constant 3.200000e+01 : f32
    %218 = vector.broadcast %cst_102 : f32 to vector<8x1xf32>
    %219 = arith.divf %217, %218 : vector<8x1xf32>
    %220 = vector.broadcast %212 : vector<8x1xf32> to vector<8x32xf32>
    %221 = arith.subf %208, %220 : vector<8x32xf32>
    %cst_103 = arith.constant 9.99999974E-6 : f32
    %222 = vector.broadcast %cst_103 : f32 to vector<8x1xf32>
    %223 = arith.addf %219, %222 : vector<8x1xf32>
    %224 = math.rsqrt %223 : vector<8x1xf32>
    %225 = vector.broadcast %224 : vector<8x1xf32> to vector<8x32xf32>
    %226 = arith.mulf %221, %225 : vector<8x32xf32>
    %227 = vector.broadcast %166 : vector<1x32xf32> to vector<8x32xf32>
    %228 = arith.mulf %226, %227 : vector<8x32xf32>
    %229 = vector.broadcast %167 : vector<1x32xf32> to vector<8x32xf32>
    %230 = arith.addf %228, %229 : vector<8x32xf32>
    %231 = arith.mulf %80, %230 : vector<8x32xf32>
    %cst_104 = arith.constant dense<0.000000e+00> : vector<8xf32>
    %232 = vector.multi_reduction <add>, %231, %cst_104 [1] : vector<8x32xf32> to vector<8xf32>
    %233 = vector.shape_cast %232 : vector<8xf32> to vector<8x1xf32>
    %234 = tpu.iota {dimensions = array<i32: 0>} : vector<8x8xi32>
    %235 = tpu.iota {dimensions = array<i32: 1>} : vector<8x8xi32>
    %236 = arith.cmpi eq, %234, %235 : vector<8x8xi32>
    %cst_105 = arith.constant 0.000000e+00 : f32
    %237 = vector.shape_cast %233 : vector<8x1xf32> to vector<8x1xf32>
    %238 = vector.broadcast %237 : vector<8x1xf32> to vector<8x8xf32>
    %239 = vector.broadcast %cst_105 : f32 to vector<8x8xf32>
    %240 = arith.select %236, %238, %239 : vector<8x8xi1>, vector<8x8xf32>
    %cst_106 = arith.constant dense<0.000000e+00> : vector<8xf32>
    %241 = vector.multi_reduction <add>, %240, %cst_106 [0] : vector<8x8xf32> to vector<8xf32>
    %242 = vector.shape_cast %241 : vector<8xf32> to vector<1x8xf32>
    %c0_107 = arith.constant 0 : index
    %c0_108 = arith.constant 0 : index
    %243 = vector.load %arg10[%c0_107, %c0_108] : memref<1x8xf32, #tpu.memory_space<vmem>>, vector<1x8xf32>
    tpu.vector_store %arg10[%c0_107, %c0_108], %242 {strides = array<i32>} : memref<1x8xf32, #tpu.memory_space<vmem>>, vector<1x8xf32>,
    return
  }
  func.func @transform_0(%arg0: i32) -> (i32, i32) {
    %c0_i32 = arith.constant 0 : i32
    %c0_i32_0 = arith.constant 0 : i32
    %c0_i32_1 = arith.constant 0 : i32
    return %c0_i32, %c0_i32_0 : i32, i32
  }
  func.func @transform_1(%arg0: i32) -> (i32, i32) {
    %c0_i32 = arith.constant 0 : i32
    %c0_i32_0 = arith.constant 0 : i32
    %c0_i32_1 = arith.constant 0 : i32
    return %c0_i32, %c0_i32_0 : i32, i32
  }
  func.func @transform_2(%arg0: i32) -> (i32, i32) {
    %c0_i32 = arith.constant 0 : i32
    %c0_i32_0 = arith.constant 0 : i32
    %c0_i32_1 = arith.constant 0 : i32
    return %c0_i32, %c0_i32_0 : i32, i32
  }
  func.func @transform_3(%arg0: i32) -> (i32, i32, i32) {
    %c0_i32 = arith.constant 0 : i32
    %c0_i32_0 = arith.constant 0 : i32
    %c0_i32_1 = arith.constant 0 : i32
    %c0_i32_2 = arith.constant 0 : i32
    return %c0_i32, %c0_i32_0, %c0_i32_1 : i32, i32, i32
  }
  func.func @transform_4(%arg0: i32) -> (i32, i32, i32) {
    %c0_i32 = arith.constant 0 : i32
    %c0_i32_0 = arith.constant 0 : i32
    %c0_i32_1 = arith.constant 0 : i32
    %c0_i32_2 = arith.constant 0 : i32
    return %c0_i32, %c0_i32_0, %c0_i32_1 : i32, i32, i32
  }
  func.func @transform_5(%arg0: i32) -> (i32, i32, i32) {
    %c0_i32 = arith.constant 0 : i32
    %c0_i32_0 = arith.constant 0 : i32
    %c0_i32_1 = arith.constant 0 : i32
    %c0_i32_2 = arith.constant 0 : i32
    return %c0_i32, %c0_i32_0, %c0_i32_1 : i32, i32, i32
  }
  func.func @transform_6(%arg0: i32) -> (i32, i32, i32) {
    %c0_i32 = arith.constant 0 : i32
    %c0_i32_0 = arith.constant 0 : i32
    %c0_i32_1 = arith.constant 0 : i32
    %c0_i32_2 = arith.constant 0 : i32
    return %c0_i32, %c0_i32_0, %c0_i32_1 : i32, i32, i32
  }
  func.func @transform_7(%arg0: i32) -> (i32, i32) {
    %c0_i32 = arith.constant 0 : i32
    %c0_i32_0 = arith.constant 0 : i32
    %c0_i32_1 = arith.constant 0 : i32
    return %c0_i32, %c0_i32_0 : i32, i32
  }
  func.func @transform_8(%arg0: i32) -> (i32, i32, i32) {
    %c0_i32 = arith.constant 0 : i32
    %c0_i32_0 = arith.constant 0 : i32
    %c0_i32_1 = arith.constant 0 : i32
    %c0_i32_2 = arith.constant 0 : i32
    return %c0_i32, %c0_i32_0, %c0_i32_1 : i32, i32, i32
  }
  func.func @transform_9(%arg0: i32) -> (i32, i32) {
    %c0_i32 = arith.constant 0 : i32
    %c0_i32_0 = arith.constant 0 : i32
    %c0_i32_1 = arith.constant 0 : i32
    return %c0_i32, %c0_i32_0 : i32, i32
  }
}

</mosaic_0001>

<bundles_post_ra>
// kernel: transformerf_forward.1
= control target key start
LH: loop header
LB: loop body
LE: loop exit
PB: predicated region body
PF: predicated region fallthrough
CT: control target
= control target key end

     0   :  { %v3342_v3 = vmov 0.0|0.0   ;;  %vm3343_vm0 = vmmov 0   ;;  %v3344_v6 = vmov 0.0   ;;  %s3920_s0 = inlined_call_operand.vmem [shape: f32[8,32], index: 0, kind: input, shape index: {}]   ;;  %s3921_s1 = inlined_call_operand.vmem [shape: f32[8,32], index: 1, kind: input, shape index: {}]   ;;  %s3922_s2 = inlined_call_operand.vmem [shape: f32[8,32], index: 2, kind: input, shape index: {}]   ;;  %s3923_s3 = inlined_call_operand.vmem [shape: f32[3,32,96], index: 3, kind: input, shape index: {}]   ;;  %s3924_s4 = inlined_call_operand.vmem [shape: f32[3,32,32], index: 4, kind: input, shape index: {}]   ;;  %s3925_s5 = inlined_call_operand.vmem [shape: f32[3,32,64], index: 5, kind: input, shape index: {}]   ;;  %s3926_s6 = inlined_call_operand.vmem [shape: f32[3,64,32], index: 6, kind: input, shape index: {}]   ;;  %s3927_s7 = inlined_call_operand.vmem [shape: f32[12,32], index: 7, kind: input, shape index: {}]   ;;  %s3928_s8 = inlined_call_operand.vmem [shape: f32[2,32,32], index: 8, kind: input, shape index: {}]   ;;  %s3929_s9 = inlined_call_operand.hbm [shape: f32[1,8], index: 9, kind: output, shape index: {}]  }
   0x1   :  { %v47_v0 = vld [vmem:[%s3923_s3] sm:$0xff]  ;;  %v48_v1 = vld [vmem:[%s3923_s3 + $0x8] sm:$0xff]  ;;  %v49_v2 = vld [vmem:[%s3923_s3 + $0x10] sm:$0xff]  ;;  %3122 = vmatprep.subr.bf16.mxu0 %v3342_v3  ;;  %2813 = vmatprep.mubr.msk.f32.mxu0 %vm3343_vm0, %v3344_v6 }
   0x2   :  { %v3123_v4 = vpack.c.bf16 %v48_v1, %v47_v0  ;;  %v50_v5 = vld [vmem:[%s3923_s3 + $0x18] sm:$0xff] }
   0x3   :  { %14 = vsyncpa [#allocation3], 0  ;;  %v3126_v7 = vpack.c.bf16 %v50_v5, %v49_v2  ;;  %v3416_v8 = vld [vmem:[%s3922_s2] sm:$0xff]  ;;  %vm67_vm1 = vcmask 261120   ;;  %s3345_s21 = smov 96   ;;  %s3346_s2 = smov 64  }
   0x4   :  { %3124 = vmatpush3.bf16.msra.mxu0 %v3123_v4  ;;  %v45_v9 = vld [vmem:[%s3920_s0] sm:$0xff]  ;;  %vm180_vm2 = vcmask 64512   ;;  %v3445_v20 = vld [vmem:[%s3928_s8 + $0x28] sm:$0xff]  ;;  %v3458_v22 = vld [vmem:[%s3928_s8 + $0x30] sm:$0xff]  ;;  %vm747_vm3 = vcmask 523264   ;;  %vm2520_vm5 = vcmask 57344  }
   0x5   :  { %3125 = vmatprep.subr.bf16.mxu0 %v3342_v3  ;;  %v3423_v10 = vadd.f32 %v45_v9, %v3416_v8  ;;  %v3440_v19 = vld [vmem:[%s3928_s8 + $0x20] sm:$0xff]  ;;  %v3463_v23 = vld [vmem:[%s3928_s8 + $0x38] sm:$0xff]  ;;  %v3475_v25 = vld [vmem:[%s3928_s8 + $0x8] sm:$0xff] }
   0x6   :  { %v3451_v21 = vpack.c.bf16 %v3445_v20, %v3440_v19  ;;  %v3467_v24 = vpack.c.bf16 %v3463_v23, %v3458_v22  ;;  %v3480_v26 = vld [vmem:[%s3928_s8] sm:$0xff]  ;;  %v3487_v32 = vld [vmem:[%s3928_s8 + $0x18] sm:$0xff]  ;;  %v3492_v33 = vld [vmem:[%s3928_s8 + $0x10] sm:$0xff] }
   0x7   :  { %v51_v39 = vld [vmem:[%s3924_s4] sm:$0xff]  ;;  %v52_v40 = vld [vmem:[%s3924_s4 + $0x8] sm:$0xff]  ;;  %v53_v46 = vld [vmem:[%s3924_s4 + $0x10] sm:$0xff] }
   0x8   :  { %3127 = vmatpush3.bf16.msra.mxu0 %v3126_v7  ;;  %v3144_v41 = vpack.c.bf16 %v52_v40, %v51_v39  ;;  %v54_v47 = vld [vmem:[%s3924_s4 + $0x18] sm:$0xff] }
   0x9   :  { %3137 = vmatprep.subr.bf16.mxu0 %v3451_v21  ;;  %v3148_v48 = vpack.c.bf16 %v54_v47, %v53_v46 }
   0xb   :  { %2814 = vmatmul.mubr.msk.f32.vlgmr.msra.gmra.mrb[0].mxu0 %vm67_vm1, %v3423_v10 }
   0xc   :  { %3139 = vmatpush3.bf16.msra.mxu0 %v3451_v21 }
   0xd   :  { %3141 = vmatprep.subr.bf16.mxu0 %v3467_v24 }
  0x10   :  { %3143 = vmatpush3.bf16.msra.mxu0 %v3467_v24 }
  0x11   :  { %3152 = vmatprep.subr.bf16.mxu0 %v3342_v3 }
  0xde   :  { %v3427_v11 = vpop.f32.mrb[0].mxu0 }
  0xdf   :  { %142 = vrot.lane.b32.xlu0 %v3427_v11, %s3345_s21  ;;  %v2815_v12 = vpop.f32.mrb[1].mxu0 }
  0xe3   :  { %177 = vrot.lane.b32.xlu0 %v3427_v11, %s3346_s2 }
 0x151   :  { %v143_v13 = vpop.permute.xlu0 %142 }
 0x152   :  { %145 = vxpose.xlu1.b32.start.end [1/1] (short) (narrow) %v143_v13, 32  ;;  %v56_v13 = vld [vmem:[%s3925_s5 + $0x8] sm:$0xff] }
 0x155   :  { %v178_v14 = vpop.permute.xlu0 %177 }
 0x156   :  { %2816 = vmatprep.subr.mxu1 %v178_v14 }
 0x157   :  { %2817 = vmatpush3.msra.mxu1 %v178_v14  ;;  %v57_v14 = vld [vmem:[%s3925_s5 + $0x10] sm:$0xff] }
 0x1d2   :  { %v161_v15 = vpop.trf.xlu1 }
 0x1d3   :  { %2818 = vmatprep.mubr.msk.f32.mxu1 %vm180_vm2, %v161_v15  ;;  %v58_v15 = vld [vmem:[%s3925_s5 + $0x18] sm:$0xff] }
 0x1d6   :  { %v162_v16 = vpop.trf.xlu1 }
 0x1d7   :  { %2819 = vmatmul.mubr.msk.f32.vlgmr.msra.gmra.mrb[0].mxu1 %vm180_vm2, %v162_v16  ;;  %v3162_v16 = vpack.c.bf16 %v58_v15, %v57_v14 }
 0x1da   :  { %v163_v17 = vpop.trf.xlu1 }
 0x1db   :  { %2821 = vmatprep.mubr.msk.f32.mxu1 %vm180_vm2, %v163_v17  ;;  %v59_v17 = vld [vmem:[%s3926_s6] sm:$0xff] }
 0x1de   :  { %v164_v18 = vpop.trf.xlu1 }
 0x1df   :  { %2822 = vmatmul.mubr.msk.f32.gmra.mrb[2].mxu1 %vm180_vm2, %v164_v18  ;;  %v60_v18 = vld [vmem:[%s3926_s6 + $0x8] sm:$0xff] }
 0x1e0   :  { %2832 = vmatprep.mubr.msk.f32.mxu1 %vm67_vm1, %v3440_v19 }
 0x2aa   :  { %v2820_v27 = vpop.f32.mrb[0].mxu1 }
 0x2ab   :  { %v279_v28 = vmul.f32 %v2820_v27, %v3475_v25  ;;  %v259_v29 = vpop.f32.mrb[1].mxu1  ;;  %v61_v27 = vld [vmem:[%s3926_s6 + $0x10] sm:$0xff] }
 0x2ac   :  { %v278_v30 = vmul.f32 %v259_v29, %v3480_v26  ;;  %v62_v29 = vld [vmem:[%s3926_s6 + $0x18] sm:$0xff] }
 0x2ae   :  { %v3128_v31 = vpack.c.bf16 %v279_v28, %v278_v30  ;;  %v3165_v28 = vpack.c.bf16 %v60_v18, %v59_v17  ;;  %v3168_v30 = vpack.c.bf16 %v62_v29, %v61_v27 }
 0x2b0   :  { %3129 = vmatprep.subr.bf16.mxu1 %v3128_v31 }
 0x2b1   :  { %3131 = vmatpush3.bf16.msra.mxu1 %v3128_v31  ;;  %v63_v31 = vld [vmem:[%s3926_s6 + $0x20] sm:$0xff] }
 0x2b2   :  { %v2823_v34 = vpop.f32.mrb[2].mxu1 }
 0x2b3   :  { %v281_v35 = vmul.f32 %v2823_v34, %v3487_v32  ;;  %v269_v36 = vpop.f32.mrb[3].mxu1  ;;  %v64_v34 = vld [vmem:[%s3926_s6 + $0x28] sm:$0xff] }
 0x2b4   :  { %v280_v37 = vmul.f32 %v269_v36, %v3492_v33 }
 0x2b6   :  { %v3132_v38 = vpack.c.bf16 %v281_v35, %v280_v37  ;;  %v3171_v35 = vpack.c.bf16 %v64_v34, %v63_v31  ;;  %v2565_v31 = vld [vmem:[%s3924_s4 + $0x28] sm:$0xff] }
 0x2b8   :  { %3133 = vmatprep.subr.bf16.mxu1 %v3132_v38 }
 0x2b9   :  { %3135 = vmatpush3.bf16.msra.mxu1 %v3132_v38  ;;  %v663_v38 = vlaneseq }
 0x2ba   :  { %3145 = vmatprep.subr.bf16.mxu1 %v3144_v41 }
 0x2bb   :  { %v3576_v40 = vshrl.u32 %v663_v38, 7 }
 0x2bc   :  { %2833 = vmatmul.mubr.msk.f32.vlgmr.msra.gmra.mrb[4].mxu1 %vm67_vm1, %v3445_v20 }
 0x2bd   :  { %2835 = vmatprep.mubr.msk.f32.mxu1 %vm67_vm1, %v3458_v22  ;;  %3147 = vmatpush3.bf16.msra.mxu1 %v3144_v41  ;;  %v665_v41 = vsub.s32 0, %v3576_v40 }
 0x2be   :  { %3149 = vmatprep.subr.bf16.mxu1 %v3148_v48 }
 0x2c0   :  { %2836 = vmatmul.mubr.msk.f32.gmra.mrb[6].mxu1 %vm67_vm1, %v3463_v23 }
 0x2c1   :  { %3151 = vmatpush3.bf16.msra.mxu1 %v3148_v48  ;;  %v2560_v48 = vld [vmem:[%s3923_s3 + $0x20] sm:$0xff] }
 0x2c2   :  { %3158 = vmatprep.subr.bf16.mxu1 %v3342_v3 }
 0x38f   :  { %v2834_v42 = vpop.f32.mrb[4].mxu1 }
 0x390   :  { %v360_v43 = vpop.f32.mrb[5].mxu1 }
 0x391   :  { %2846 = vmatprep.mubr.msk.f32.mxu0 %vm67_vm1, %v360_v43  ;;  %v670_v43 = vsub.s32 1, %v3576_v40 }
 0x392   :  { %2847 = vmatmul.mubr.msk.f32.vlgmr.msra.gmra.mrb[2].mxu0 %vm67_vm1, %v2834_v42  ;;  %v3582_v42 = vld [vmem:[%s3927_s7] sm:$0xff] }
 0x393   :  { %v2837_v44 = vpop.f32.mrb[6].mxu1  ;;  %v671_v46 = vrot.slane %v3582_v42, %v670_v43 }
 0x394   :  { %v370_v45 = vpop.f32.mrb[7].mxu1 }
 0x395   :  { %2849 = vmatprep.mubr.msk.f32.mxu0 %vm67_vm1, %v370_v45 }
 0x396   :  { %2850 = vmatmul.mubr.msk.f32.gmra.mrb[4].mxu0 %vm67_vm1, %v2837_v44  ;;  %v666_v44 = vrot.slane %v3582_v42, %v665_v41 }
 0x397   :  { %2874 = vmatprep.mubr.msk.f32.mxu0 %vm3343_vm0, %v3344_v6 }
 0x465   :  { %v2848_v49 = vpop.f32.mrb[2].mxu0 }
 0x466   :  { %v457_v50 = vpop.f32.mrb[3].mxu0  ;;  %v477_v52 = vmul.f32 %v2848_v49, %v3475_v25  ;;  %v2561_v49 = vld [vmem:[%s3923_s3 + $0x28] sm:$0xff] }
 0x467   :  { %v476_v51 = vmul.f32 %v457_v50, %v3480_v26 }
 0x469   :  { %v2851_v53 = vpop.f32.mrb[4].mxu0  ;;  %2860 = vmatprep.mubr.msk.f32.mxu1 %vm67_vm1, %v476_v51  ;;  %v3177_v51 = vpack.c.bf16 %v2561_v49, %v2560_v48 }
 0x46a   :  { %v467_v54 = vpop.f32.mrb[5].mxu0  ;;  %2861 = vmatmul.mubr.msk.f32.vlgmr.msra.gmra.mrb[8].mxu1 %vm67_vm1, %v477_v52  ;;  %v479_v56 = vmul.f32 %v2851_v53, %v3487_v32  ;;  %v2562_v53 = vld [vmem:[%s3923_s3 + $0x30] sm:$0xff] }
 0x46b   :  { %v478_v55 = vmul.f32 %v467_v54, %v3492_v33  ;;  %v2563_v54 = vld [vmem:[%s3923_s3 + $0x38] sm:$0xff] }
 0x46d   :  { %2863 = vmatprep.mubr.msk.f32.mxu1 %vm67_vm1, %v478_v55  ;;  %v844_v55 = vld [vmem:[%s3921_s1] sm:$0xff] }
 0x46e   :  { %2864 = vmatmul.mubr.msk.f32.gmra.mrb[10].mxu1 %vm67_vm1, %v479_v56  ;;  %v3180_v56 = vpack.c.bf16 %v2563_v54, %v2562_v53 }
 0x46f   :  { %2885 = vmatprep.mubr.msk.f32.mxu1 %vm3343_vm0, %v3344_v6 }
 0x53d   :  { %v2862_v57 = vpop.f32.mrb[8].mxu1 }
 0x53e   :  { %v558_v58 = vpop.f32.mrb[9].mxu1 }
 0x53f   :  { %v3153_v59 = vpack.c.bf16 %v2862_v57, %v558_v58  ;;  %v3614_v57 = vadd.f32 %v844_v55, %v3416_v8  ;;  %v65_v58 = vld [vmem:[%s3926_s6 + $0x30] sm:$0xff] }
 0x541   :  { %v2865_v60 = vpop.f32.mrb[10].mxu1  ;;  %3154 = vmatpush3.bf16.msra.mxu0 %v3153_v59  ;;  %v66_v59 = vld [vmem:[%s3926_s6 + $0x38] sm:$0xff] }
 0x542   :  { %v568_v61 = vpop.f32.mrb[11].mxu1  ;;  %3155 = vmatprep.subr.bf16.mxu0 %v3342_v3 }
 0x543   :  { %v3156_v62 = vpack.c.bf16 %v2865_v60, %v568_v61  ;;  %v3174_v60 = vpack.c.bf16 %v66_v59, %v65_v58 }
 0x545   :  { %3157 = vmatpush3.bf16.msra.mxu0 %v3156_v62 }
 0x546   :  { %3164 = vmatprep.subr.bf16.mxu0 %v3342_v3 }
 0x548   :  { %2875 = vmatmul.mubr.msk.f32.vlgmr.msra.gmra.mrb[6].mxu0 %vm67_vm1, %v3427_v11  ;;  %v55_v11 = vld [vmem:[%s3925_s5] sm:$0xff] }
 0x549   :  { %2904 = vmatprep.mubr.msk.f32.mxu0 %vm3343_vm0, %v3344_v6  ;;  %3166 = vmatpush3.bf16.msra.mxu0 %v3165_v28 }
 0x54a   :  { %3167 = vmatprep.subr.bf16.mxu0 %v3342_v3 }
 0x54d   :  { %3169 = vmatpush3.bf16.msra.mxu0 %v3168_v30  ;;  %v2564_v30 = vld [vmem:[%s3924_s4 + $0x20] sm:$0xff] }
 0x54e   :  { %3170 = vmatprep.subr.bf16.mxu0 %v3342_v3  ;;  %v3198_v34 = vpack.c.bf16 %v2565_v31, %v2564_v30  ;;  %v2576_v30 = vld [vmem:[%s3926_s6 + $0x60] sm:$0xff]  ;;  %v2577_v31 = vld [vmem:[%s3926_s6 + $0x68] sm:$0xff] }
 0x551   :  { %3172 = vmatpush3.bf16.msra.mxu0 %v3171_v35 }
 0x552   :  { %3173 = vmatprep.subr.bf16.mxu0 %v3342_v3 }
 0x555   :  { %3175 = vmatpush3.bf16.msra.mxu0 %v3174_v60 }
 0x61b   :  { %v645_v63 = vpop.f32.mrb[6].mxu0 }
 0x61c   :  { %v646_v0 = vadd.f32 %v645_v63, %v3423_v10  ;;  %v2876_v1 = vpop.f32.mrb[7].mxu0  ;;  %v3159_v10 = vpack.c.bf16 %v56_v13, %v55_v11 }
 0x61e   :  { %v649_v2 = vsel %vm67_vm1, %v646_v0, 0.0  ;;  %3160 = vmatpush3.bf16.msra.mxu1 %v3159_v10 }
 0x61f   :  { %650 = vadd.xlane.f32.xlu1 %v649_v2  ;;  %3161 = vmatprep.subr.bf16.mxu1 %v3342_v3 }
 0x622   :  { %3163 = vmatpush3.bf16.msra.mxu1 %v3162_v16 }
 0x623   :  { %3176 = vmatprep.subr.bf16.mxu1 %v3342_v3 }
 0x6ac   :  { %v651_v4 = vpop.xlane.xlu1 %650 }
 0x6ad   :  { %v653_v5 = vmul.f32 0.03125, %v651_v4 }
 0x6af   :  { %v654_v7 = vsub.f32 %v646_v0, %v653_v5 }
 0x6b1   :  { %v655_v9 = vmul.f32 %v654_v7, %v654_v7 }
 0x6b3   :  { %v656_v12 = vsel %vm67_vm1, %v655_v9, 0.0 }
 0x6b4   :  { %657 = vadd.xlane.f32.xlu0 %v656_v12 }
 0x741   :  { %v658_v36 = vpop.xlane.xlu0 %657 }
 0x742   :  { %v659_v37 = vmul.f32 0.03125, %v658_v36 }
 0x744   :  { %v660_v39 = vadd.f32 1e-05, %v659_v37 }
 0x746   :  { %3306 = vrsqrt.f32 %v660_v39 }
 0x750   :  { %v3307_v45 = vpop.eup %3306 }
 0x751   :  { %v662_v47 = vmul.f32 %v3307_v45, %v654_v7  ;;  %v2567_v45 = vld [vmem:[%s3924_s4 + $0x38] sm:$0xff] }
 0x753   :  { %v667_v50 = vmul.f32 %v666_v44, %v662_v47  ;;  %v2566_v44 = vld [vmem:[%s3924_s4 + $0x30] sm:$0xff] }
 0x755   :  { %v3597_v52 = vadd.f32 %v671_v46, %v667_v50  ;;  %v3202_v46 = vpack.c.bf16 %v2567_v45, %v2566_v44  ;;  %v1458_v44 = vsub.s32 5, %v3576_v40 }
 0x757   :  { %2886 = vmatmul.mubr.msk.f32.vlgmr.msra.gmra.mrb[12].mxu1 %vm67_vm1, %v3597_v52 }
 0x758   :  { %3178 = vmatpush3.bf16.msra.mxu1 %v3177_v51  ;;  %2915 = vmatprep.mubr.msk.f32.mxu1 %vm3343_vm0, %v3344_v6 }
 0x759   :  { %3179 = vmatprep.subr.bf16.mxu1 %v3342_v3 }
 0x75c   :  { %3181 = vmatpush3.bf16.msra.mxu1 %v3180_v56 }
 0x75f   :  { %2916 = vmatmul.mubr.msk.f32.vlgmr.msra.gmra.mrb[14].mxu1 %vm67_vm1, %v3614_v57 }
 0x760   :  { %2934 = vmatprep.mubr.msk.f32.mxu1 %vm67_vm1, %v3440_v19 }
 0x82a   :  { %v742_v61 = vpop.f32.mrb[12].mxu1 }
 0x82b   :  { %v746_v8 = vmax.f32 %v742_v61, 0.0  ;;  %v2887_v62 = vpop.f32.mrb[13].mxu1 }
 0x82d   :  { %2905 = vmatmul.mubr.msk.f32.vlgmr.msra.gmra.mrb[8].mxu0 %vm747_vm3, %v746_v8 }
 0x832   :  { %v3627_v63 = vpop.f32.mrb[14].mxu1 }
 0x833   :  { %979 = vrot.lane.b32.xlu1 %v3627_v63, %s3346_s2  ;;  %944 = vrot.lane.b32.xlu0 %v3627_v63, %s3345_s21  ;;  %v2917_v0 = vpop.f32.mrb[15].mxu1 }
 0x8a5   :  { %v980_v1 = vpop.permute.xlu1 %979  ;;  %v945_v2 = vpop.permute.xlu0 %944 }
 0x8a6   :  { %2918 = vmatprep.subr.mxu0 %v980_v1  ;;  %947 = vxpose.xlu0.b32.start.end [1/1] (short) (narrow) %v945_v2, 32 }
 0x8a7   :  { %2919 = vmatpush3.msra.mxu0 %v980_v1 }
 0x8a8   :  { %3191 = vmatprep.subr.bf16.mxu0 %v3451_v21 }
 0x900   :  { %v3634_v4 = vpop.f32.mrb[8].mxu0 }
 0x901   :  { %v2906_v5 = vpop.f32.mrb[9].mxu0 }
 0x926   :  { %v963_v7 = vpop.trf.xlu0 }
 0x927   :  { %2920 = vmatprep.mubr.msk.f32.mxu0 %vm180_vm2, %v963_v7 }
 0x92a   :  { %v964_v9 = vpop.trf.xlu0 }
 0x92b   :  { %2921 = vmatmul.mubr.msk.f32.vlgmr.msra.gmra.mrb[10].mxu0 %vm180_vm2, %v964_v9 }
 0x92c   :  { %3193 = vmatpush3.bf16.msra.mxu0 %v3451_v21 }
 0x92d   :  { %3195 = vmatprep.subr.bf16.mxu0 %v3467_v24 }
 0x92e   :  { %v965_v12 = vpop.trf.xlu0 }
 0x92f   :  { %2923 = vmatprep.mubr.msk.f32.mxu0 %vm180_vm2, %v965_v12 }
 0x930   :  { %3197 = vmatpush3.bf16.msra.mxu0 %v3467_v24 }
 0x931   :  { %3206 = vmatprep.subr.bf16.mxu0 %v3342_v3 }
 0x932   :  { %v966_v11 = vpop.trf.xlu0 }
 0x933   :  { %2924 = vmatmul.mubr.msk.f32.gmra.mrb[12].mxu0 %vm180_vm2, %v966_v11 }
 0x9fe   :  { %v2922_v13 = vpop.f32.mrb[10].mxu0 }
 0x9ff   :  { %v1080_v10 = vmul.f32 %v2922_v13, %v3475_v25  ;;  %v1060_v14 = vpop.f32.mrb[11].mxu0  ;;  %v2569_v13 = vld [vmem:[%s3925_s5 + $0x28] sm:$0xff] }
 0xa00   :  { %v1079_v15 = vmul.f32 %v1060_v14, %v3480_v26  ;;  %v2571_v14 = vld [vmem:[%s3925_s5 + $0x38] sm:$0xff] }
 0xa02   :  { %v3182_v16 = vpack.c.bf16 %v1080_v10, %v1079_v15  ;;  %v2570_v10 = vld [vmem:[%s3925_s5 + $0x30] sm:$0xff] }
 0xa03   :  { %v3216_v15 = vpack.c.bf16 %v2571_v14, %v2570_v10 }
 0xa04   :  { %3183 = vmatprep.subr.bf16.mxu1 %v3182_v16 }
 0xa05   :  { %3185 = vmatpush3.bf16.msra.mxu1 %v3182_v16  ;;  %v2572_v16 = vld [vmem:[%s3926_s6 + $0x40] sm:$0xff] }
 0xa06   :  { %v2925_v17 = vpop.f32.mrb[12].mxu0 }
 0xa07   :  { %v1082_v18 = vmul.f32 %v2925_v17, %v3487_v32  ;;  %v1070_v27 = vpop.f32.mrb[13].mxu0  ;;  %v2573_v17 = vld [vmem:[%s3926_s6 + $0x48] sm:$0xff] }
 0xa08   :  { %v1081_v28 = vmul.f32 %v1070_v27, %v3492_v33  ;;  %v3219_v27 = vpack.c.bf16 %v2573_v17, %v2572_v16 }
 0xa0a   :  { %v3186_v29 = vpack.c.bf16 %v1082_v18, %v1081_v28  ;;  %v2574_v18 = vld [vmem:[%s3926_s6 + $0x50] sm:$0xff]  ;;  %v2575_v28 = vld [vmem:[%s3926_s6 + $0x58] sm:$0xff] }
 0xa0c   :  { %3187 = vmatprep.subr.bf16.mxu1 %v3186_v29 }
 0xa0d   :  { %3189 = vmatpush3.bf16.msra.mxu1 %v3186_v29  ;;  %v3222_v29 = vpack.c.bf16 %v2575_v28, %v2574_v18 }
 0xa0e   :  { %3199 = vmatprep.subr.bf16.mxu1 %v3198_v34 }
 0xa10   :  { %2935 = vmatmul.mubr.msk.f32.vlgmr.msra.gmra.mrb[16].mxu1 %vm67_vm1, %v3445_v20 }
 0xa11   :  { %2937 = vmatprep.mubr.msk.f32.mxu1 %vm67_vm1, %v3458_v22  ;;  %3201 = vmatpush3.bf16.msra.mxu1 %v3198_v34  ;;  %v3225_v34 = vpack.c.bf16 %v2577_v31, %v2576_v30 }
 0xa12   :  { %3203 = vmatprep.subr.bf16.mxu1 %v3202_v46 }
 0xa14   :  { %2938 = vmatmul.mubr.msk.f32.gmra.mrb[18].mxu1 %vm67_vm1, %v3463_v23 }
 0xa15   :  { %3205 = vmatpush3.bf16.msra.mxu1 %v3202_v46 }
 0xa16   :  { %3212 = vmatprep.subr.bf16.mxu1 %v3342_v3 }
 0xae3   :  { %v2936_v35 = vpop.f32.mrb[16].mxu1 }
 0xae4   :  { %v1149_v36 = vpop.f32.mrb[17].mxu1 }
 0xae5   :  { %2948 = vmatprep.mubr.msk.f32.mxu0 %vm67_vm1, %v1149_v36 }
 0xae6   :  { %2949 = vmatmul.mubr.msk.f32.vlgmr.msra.gmra.mrb[14].mxu0 %vm67_vm1, %v2936_v35 }
 0xae7   :  { %v2939_v37 = vpop.f32.mrb[18].mxu1 }
 0xae8   :  { %v1159_v39 = vpop.f32.mrb[19].mxu1 }
 0xae9   :  { %2951 = vmatprep.mubr.msk.f32.mxu0 %vm67_vm1, %v1159_v39  ;;  %v1453_v39 = vsub.s32 4, %v3576_v40 }
 0xaea   :  { %2952 = vmatmul.mubr.msk.f32.gmra.mrb[16].mxu0 %vm67_vm1, %v2939_v37 }
 0xaeb   :  { %2976 = vmatprep.mubr.msk.f32.mxu0 %vm3343_vm0, %v3344_v6  ;;  %v1454_v45 = vrot.slane %v3582_v42, %v1453_v39 }
 0xbb9   :  { %v2950_v47 = vpop.f32.mrb[14].mxu0 }
 0xbba   :  { %v1246_v48 = vpop.f32.mrb[15].mxu0  ;;  %v1266_v50 = vmul.f32 %v2950_v47, %v3475_v25  ;;  %v1459_v47 = vrot.slane %v3582_v42, %v1458_v44 }
 0xbbb   :  { %v1265_v49 = vmul.f32 %v1246_v48, %v3480_v26 }
 0xbbd   :  { %v2953_v51 = vpop.f32.mrb[16].mxu0  ;;  %2962 = vmatprep.mubr.msk.f32.mxu1 %vm67_vm1, %v1265_v49 }
 0xbbe   :  { %v1256_v53 = vpop.f32.mrb[17].mxu0  ;;  %2963 = vmatmul.mubr.msk.f32.vlgmr.msra.gmra.mrb[20].mxu1 %vm67_vm1, %v1266_v50  ;;  %v1268_v55 = vmul.f32 %v2953_v51, %v3487_v32  ;;  %v2578_v51 = vld [vmem:[%s3926_s6 + $0x70] sm:$0xff] }
 0xbbf   :  { %v1267_v54 = vmul.f32 %v1256_v53, %v3492_v33  ;;  %v2579_v53 = vld [vmem:[%s3926_s6 + $0x78] sm:$0xff] }
 0xbc1   :  { %2965 = vmatprep.mubr.msk.f32.mxu1 %vm67_vm1, %v1267_v54  ;;  %v3228_v54 = vpack.c.bf16 %v2579_v53, %v2578_v51 }
 0xbc2   :  { %2966 = vmatmul.mubr.msk.f32.gmra.mrb[22].mxu1 %vm67_vm1, %v1268_v55 }
 0xbc3   :  { %2987 = vmatprep.mubr.msk.f32.mxu1 %vm3343_vm0, %v3344_v6 }
 0xc91   :  { %v2964_v56 = vpop.f32.mrb[20].mxu1 }
 0xc92   :  { %v1347_v58 = vpop.f32.mrb[21].mxu1 }
 0xc93   :  { %v3207_v59 = vpack.c.bf16 %v2964_v56, %v1347_v58 }
 0xc95   :  { %v2967_v60 = vpop.f32.mrb[22].mxu1  ;;  %3208 = vmatpush3.bf16.msra.mxu0 %v3207_v59 }
 0xc96   :  { %v1357_v61 = vpop.f32.mrb[23].mxu1  ;;  %3209 = vmatprep.subr.bf16.mxu0 %v3342_v3 }
 0xc97   :  { %v3210_v8 = vpack.c.bf16 %v2967_v60, %v1357_v61 }
 0xc99   :  { %3211 = vmatpush3.bf16.msra.mxu0 %v3210_v8  ;;  %v818_v8 = vadd.f32 %v3634_v4, %v3597_v52  ;;  %v2602_v52 = vld [vmem:[%s3923_s3 + $0x50] sm:$0xff]  ;;  %v2603_v4 = vld [vmem:[%s3923_s3 + $0x58] sm:$0xff] }
 0xc9a   :  { %3218 = vmatprep.subr.bf16.mxu0 %v3342_v3 }
 0xc9c   :  { %2977 = vmatmul.mubr.msk.f32.vlgmr.msra.gmra.mrb[18].mxu0 %vm67_vm1, %v3627_v63  ;;  %v2568_v63 = vld [vmem:[%s3925_s5 + $0x20] sm:$0xff] }
 0xc9d   :  { %3006 = vmatprep.mubr.msk.f32.mxu0 %vm3343_vm0, %v3344_v6  ;;  %3220 = vmatpush3.bf16.msra.mxu0 %v3219_v27 }
 0xc9e   :  { %3221 = vmatprep.subr.bf16.mxu0 %v3342_v3 }
 0xca1   :  { %3223 = vmatpush3.bf16.msra.mxu0 %v3222_v29 }
 0xca2   :  { %3224 = vmatprep.subr.bf16.mxu0 %v3342_v3 }
 0xca5   :  { %3226 = vmatpush3.bf16.msra.mxu0 %v3225_v34 }
 0xca6   :  { %3227 = vmatprep.subr.bf16.mxu0 %v3342_v3 }
 0xca9   :  { %3229 = vmatpush3.bf16.msra.mxu0 %v3228_v54 }
 0xd6f   :  { %v1434_v62 = vpop.f32.mrb[18].mxu0 }
 0xd70   :  { %v1435_v0 = vadd.f32 %v1434_v62, %v3614_v57  ;;  %v2978_v1 = vpop.f32.mrb[19].mxu0  ;;  %v3213_v57 = vpack.c.bf16 %v2569_v13, %v2568_v63 }
 0xd71   :  { %v2600_v1 = vld [vmem:[%s3923_s3 + $0x40] sm:$0xff] }
 0xd72   :  { %v1438_v2 = vsel %vm67_vm1, %v1435_v0, 0.0  ;;  %3214 = vmatpush3.bf16.msra.mxu1 %v3213_v57 }
 0xd73   :  { %1439 = vadd.xlane.f32.xlu1 %v1438_v2  ;;  %3215 = vmatprep.subr.bf16.mxu1 %v3342_v3  ;;  %v2601_v2 = vld [vmem:[%s3923_s3 + $0x48] sm:$0xff] }
 0xd76   :  { %3217 = vmatpush3.bf16.msra.mxu1 %v3216_v15 }
 0xd77   :  { %3230 = vmatprep.subr.bf16.mxu1 %v3342_v3 }
 0xe00   :  { %v1440_v5 = vpop.xlane.xlu1 %1439 }
 0xe01   :  { %v1441_v7 = vmul.f32 0.03125, %v1440_v5  ;;  %v3296_v5 = vpack.i.bf16 %v2601_v2, %v2600_v1 }
 0xe03   :  { %v1442_v9 = vsub.f32 %v1435_v0, %v1441_v7  ;;  %v821_v0 = vsel %vm67_vm1, %v818_v8, 0.0  ;;  %v3231_v7 = vpack.c.bf16 %v2601_v2, %v2600_v1 }
 0xe05   :  { %v1443_v12 = vmul.f32 %v1442_v9, %v1442_v9 }
 0xe07   :  { %v1444_v11 = vsel %vm67_vm1, %v1443_v12, 0.0  ;;  %v3234_v12 = vpack.c.bf16 %v2603_v4, %v2602_v52 }
 0xe08   :  { %1445 = vadd.xlane.f32.xlu0 %v1444_v11 }
 0xe95   :  { %v1446_v35 = vpop.xlane.xlu0 %1445 }
 0xe96   :  { %v1447_v36 = vmul.f32 0.03125, %v1446_v35 }
 0xe98   :  { %v1448_v37 = vadd.f32 1e-05, %v1447_v36  ;;  %v1623_v36 = vsub.s32 6, %v3576_v40 }
 0xe9a   :  { %3308 = vrsqrt.f32 %v1448_v37  ;;  %v1628_v37 = vsub.s32 7, %v3576_v40  ;;  %v1624_v39 = vrot.slane %v3582_v42, %v1623_v36 }
 0xea4   :  { %v3309_v46 = vpop.eup %3308 }
 0xea5   :  { %v1450_v48 = vmul.f32 %v3309_v46, %v1442_v9  ;;  %v3301_v9 = vpack.i.bf16 %v2603_v4, %v2602_v52 }
 0xea7   :  { %v1455_v49 = vmul.f32 %v1454_v45, %v1450_v48 }
 0xea9   :  { %v1460_v50 = vadd.f32 %v1459_v47, %v1455_v49  ;;  %v1629_v49 = vrot.slane %v3582_v42, %v1628_v37 }
 0xeab   :  { %2988 = vmatmul.mubr.msk.f32.vlgmr.msra.gmra.mrb[24].mxu1 %vm67_vm1, %v1460_v50 }
 0xeac   :  { %3017 = vmatprep.mubr.msk.f32.mxu1 %vm3343_vm0, %v3344_v6  ;;  %3232 = vmatpush3.bf16.msra.mxu1 %v3231_v7 }
 0xead   :  { %3233 = vmatprep.subr.bf16.mxu1 %v3342_v3 }
 0xeb0   :  { %3235 = vmatpush3.bf16.msra.mxu1 %v3234_v12 }
 0xeb1   :  { %3236 = vmatprep.subr.bf16.mxu1 %v3342_v3 }
 0xf7e   :  { %v1530_v55 = vpop.f32.mrb[24].mxu1 }
 0xf7f   :  { %v1534_v56 = vmax.f32 %v1530_v55, 0.0  ;;  %v2989_v58 = vpop.f32.mrb[25].mxu1 }
 0xf81   :  { %3007 = vmatmul.mubr.msk.f32.vlgmr.msra.gmra.mrb[20].mxu0 %vm747_vm3, %v1534_v56 }
0x1054   :  { %v1604_v59 = vpop.f32.mrb[20].mxu0 }
0x1055   :  { %v1605_v60 = vadd.f32 %v1604_v59, %v1460_v50  ;;  %v3008_v61 = vpop.f32.mrb[21].mxu0  ;;  %v836_v50 = vsub.s32 2, %v3576_v40 }
0x1056   :  { %v841_v61 = vsub.s32 3, %v3576_v40 }
0x1057   :  { %v1608_v62 = vsel %vm67_vm1, %v1605_v60, 0.0 }
0x1058   :  { %1609 = vadd.xlane.f32.xlu1 %v1608_v62 }
0x105c   :  { %822 = vadd.xlane.f32.xlu1 %v821_v0  ;;  %v842_v0 = vrot.slane %v3582_v42, %v841_v61 }
0x10e5   :  { %v1610_v11 = vpop.xlane.xlu1 %1609 }
0x10e6   :  { %v1611_v63 = vmul.f32 0.03125, %v1610_v11 }
0x10e8   :  { %v1612_v10 = vsub.f32 %v1605_v60, %v1611_v63  ;;  %v837_v60 = vrot.slane %v3582_v42, %v836_v50 }
0x10e9   :  { %v823_v13 = vpop.xlane.xlu1 %822 }
0x10ea   :  { %v824_v57 = vmul.f32 0.03125, %v823_v13  ;;  %v1613_v17 = vmul.f32 %v1612_v10, %v1612_v10 }
0x10ec   :  { %v825_v14 = vsub.f32 %v818_v8, %v824_v57  ;;  %v1614_v18 = vsel %vm67_vm1, %v1613_v17, 0.0 }
0x10ee   :  { %v826_v15 = vmul.f32 %v825_v14, %v825_v14 }
0x10f0   :  { %v827_v16 = vsel %vm67_vm1, %v826_v15, 0.0 }
0x10f1   :  { %828 = vadd.xlane.f32.xlu1 %v827_v16 }
0x10f5   :  { %1615 = vadd.xlane.f32.xlu1 %v1614_v18  ;;  %v2605_v18 = vld [vmem:[%s3924_s4 + $0x48] sm:$0xff] }
0x1106   :  { %3297 = vrot.lane.b32.xlu1 %v3296_v5, %s3345_s21 }
0x110a   :  { %3302 = vrot.lane.b32.xlu1 %v3301_v9, %s3345_s21 }
0x117e   :  { %v829_v27 = vpop.xlane.xlu1 %828 }
0x117f   :  { %v830_v28 = vmul.f32 0.03125, %v829_v27 }
0x1181   :  { %v831_v31 = vadd.f32 1e-05, %v830_v28 }
0x1182   :  { %v1616_v29 = vpop.xlane.xlu1 %1615 }
0x1183   :  { %v1617_v30 = vmul.f32 0.03125, %v1616_v29 }
0x1185   :  { %v1618_v34 = vadd.f32 1e-05, %v1617_v30  ;;  %v2607_v30 = vld [vmem:[%s3924_s4 + $0x58] sm:$0xff] }
0x1186   :  { %v3298_v35 = vpop.permute.xlu1 %3297 }
0x1187   :  { %3310 = vrsqrt.f32 %v1618_v34  ;;  %v3300_v45 = vunpack.i.h.bf16 %v3298_v35  ;;  %v3299_v46 = vunpack.i.l.bf16 %v3298_v35 }
0x1188   :  { %3312 = vrsqrt.f32 %v831_v31 }
0x1189   :  { %v3237_v54 = vpack.c.bf16 %v3300_v45, %v3299_v46 }
0x118a   :  { %v3303_v48 = vpop.permute.xlu1 %3302 }
0x118b   :  { %v3305_v55 = vunpack.i.h.bf16 %v3303_v48  ;;  %v3304_v56 = vunpack.i.l.bf16 %v3303_v48 }
0x118d   :  { %v3240_v8 = vpack.c.bf16 %v3305_v55, %v3304_v56 }
0x1191   :  { %v3311_v44 = vpop.eup %3310 }
0x1192   :  { %v1620_v47 = vmul.f32 %v3311_v44, %v1612_v10  ;;  %v3313_v51 = vpop.eup %3312 }
0x1193   :  { %v833_v58 = vmul.f32 %v3313_v51, %v825_v14 }
0x1194   :  { %v1625_v53 = vmul.f32 %v1624_v39, %v1620_v47 }
0x1195   :  { %v838_v62 = vmul.f32 %v837_v60, %v833_v58 }
0x1196   :  { %v3768_v59 = vadd.f32 %v1629_v49, %v1625_v53 }
0x1197   :  { %v3782_v1 = vadd.f32 %v842_v0, %v838_v62  ;;  %v2608_v62 = vld [vmem:[%s3925_s5 + $0x40] sm:$0xff]  ;;  %v2610_v0 = vld [vmem:[%s3925_s5 + $0x50] sm:$0xff] }
0x1198   :  { %3018 = vmatmul.mubr.msk.f32.vlgmr.msra.gmra.mrb[26].mxu1 %vm67_vm1, %v3768_v59 }
0x1199   :  { %3238 = vmatpush3.bf16.msra.mxu1 %v3237_v54  ;;  %3028 = vmatprep.mubr.msk.f32.mxu1 %vm3343_vm0, %v3344_v6 }
0x119a   :  { %3239 = vmatprep.subr.bf16.mxu1 %v3342_v3 }
0x119d   :  { %3241 = vmatpush3.bf16.msra.mxu1 %v3240_v8 }
0x119e   :  { %3251 = vmatprep.subr.bf16.mxu1 %v3451_v21 }
0x11a0   :  { %3029 = vmatmul.mubr.msk.f32.vlgmr.msra.gmra.mrb[28].mxu1 %vm67_vm1, %v3782_v1 }
0x11a1   :  { %3253 = vmatpush3.bf16.msra.mxu1 %v3451_v21 }
0x11a2   :  { %3255 = vmatprep.subr.bf16.mxu1 %v3467_v24 }
0x11a5   :  { %3257 = vmatpush3.bf16.msra.mxu1 %v3467_v24 }
0x11a6   :  { %3266 = vmatprep.subr.bf16.mxu1 %v3342_v3 }
0x126b   :  { %v3791_v2 = vpop.f32.mrb[26].mxu1 }
0x126c   :  { %v3019_v5 = vpop.f32.mrb[27].mxu1 }
0x1273   :  { %v1813_v42 = vpop.f32.mrb[28].mxu1 }
0x1274   :  { %1817 = vxpose.xlu0.b32.start.end [1/1] (short) (narrow) %v1813_v42, 32  ;;  %1850 = vrot.lane.b32.xlu1 %v1813_v42, %s3345_s21  ;;  %v3030_v7 = vpop.f32.mrb[29].mxu1  ;;  %v2612_v42 = vld [vmem:[%s3926_s6 + $0x80] sm:$0xff] }
0x1275   :  { %v2613_v7 = vld [vmem:[%s3926_s6 + $0x88] sm:$0xff] }
0x12e6   :  { %v1851_v52 = vpop.permute.xlu1 %1850 }
0x12e7   :  { %3031 = vmatprep.subr.mxu0 %v1851_v52 }
0x12e8   :  { %3032 = vmatpush3.msra.mxu0 %v1851_v52  ;;  %v2614_v52 = vld [vmem:[%s3926_s6 + $0x90] sm:$0xff] }
0x12f4   :  { %v1833_v4 = vpop.trf.xlu0 }
0x12f5   :  { %3033 = vmatprep.mubr.msk.f32.mxu0 %vm180_vm2, %v1833_v4  ;;  %v3279_v4 = vpack.c.bf16 %v2613_v7, %v2612_v42 }
0x12f8   :  { %v1834_v21 = vpop.trf.xlu0 }
0x12f9   :  { %3034 = vmatmul.mubr.msk.f32.vlgmr.msra.gmra.mrb[22].mxu0 %vm180_vm2, %v1834_v21  ;;  %v2615_v21 = vld [vmem:[%s3926_s6 + $0x98] sm:$0xff] }
0x12fc   :  { %v1835_v24 = vpop.trf.xlu0 }
0x12fd   :  { %3036 = vmatprep.mubr.msk.f32.mxu0 %vm180_vm2, %v1835_v24  ;;  %v3282_v24 = vpack.c.bf16 %v2615_v21, %v2614_v52 }
0x1300   :  { %v1836_v9 = vpop.trf.xlu0 }
0x1301   :  { %3037 = vmatmul.mubr.msk.f32.gmra.mrb[24].mxu0 %vm180_vm2, %v1836_v9  ;;  %v2616_v9 = vld [vmem:[%s3926_s6 + $0xa0] sm:$0xff] }
0x1302   :  { %3047 = vmatprep.mubr.msk.f32.mxu0 %vm67_vm1, %v3440_v19  ;;  %v2604_v19 = vld [vmem:[%s3924_s4 + $0x40] sm:$0xff] }
0x1303   :  { %v3258_v27 = vpack.c.bf16 %v2605_v18, %v2604_v19 }
0x13cc   :  { %v3035_v12 = vpop.f32.mrb[22].mxu0 }
0x13cd   :  { %v1951_v11 = vmul.f32 %v3035_v12, %v3475_v25  ;;  %v1931_v63 = vpop.f32.mrb[23].mxu0  ;;  %v2617_v12 = vld [vmem:[%s3926_s6 + $0xa8] sm:$0xff] }
0x13ce   :  { %v1950_v13 = vmul.f32 %v1931_v63, %v3480_v26 }
0x13d0   :  { %v3242_v57 = vpack.c.bf16 %v1951_v11, %v1950_v13  ;;  %v3285_v11 = vpack.c.bf16 %v2617_v12, %v2616_v9 }
0x13d2   :  { %3243 = vmatprep.subr.bf16.mxu0 %v3242_v57 }
0x13d3   :  { %3245 = vmatpush3.bf16.msra.mxu0 %v3242_v57 }
0x13d4   :  { %v3038_v10 = vpop.f32.mrb[24].mxu0 }
0x13d5   :  { %v1953_v14 = vmul.f32 %v3038_v10, %v3487_v32  ;;  %v1941_v15 = vpop.f32.mrb[25].mxu0  ;;  %v35_v10 = vld [vmem:[%s3927_s7 + $0x8] sm:$0xf] }
0x13d6   :  { %v1952_v16 = vmul.f32 %v1941_v15, %v3492_v33 }
0x13d8   :  { %v3246_v17 = vpack.c.bf16 %v1953_v14, %v1952_v16  ;;  %v2326_v14 = vrot.slane %v35_v10, %v665_v41  ;;  %v2331_v16 = vrot.slane %v35_v10, %v670_v43 }
0x13da   :  { %3247 = vmatprep.subr.bf16.mxu0 %v3246_v17 }
0x13db   :  { %3249 = vmatpush3.bf16.msra.mxu0 %v3246_v17 }
0x13dc   :  { %3259 = vmatprep.subr.bf16.mxu0 %v3258_v27 }
0x13de   :  { %3048 = vmatmul.mubr.msk.f32.vlgmr.msra.gmra.mrb[26].mxu0 %vm67_vm1, %v3445_v20 }
0x13df   :  { %3050 = vmatprep.mubr.msk.f32.mxu0 %vm67_vm1, %v3458_v22  ;;  %3261 = vmatpush3.bf16.msra.mxu0 %v3258_v27  ;;  %v2619_v27 = vld [vmem:[%s3926_s6 + $0xb8] sm:$0xff] }
0x13e2   :  { %3051 = vmatmul.mubr.msk.f32.gmra.mrb[28].mxu0 %vm67_vm1, %v3463_v23  ;;  %v2606_v23 = vld [vmem:[%s3924_s4 + $0x50] sm:$0xff] }
0x13e3   :  { %v3262_v31 = vpack.c.bf16 %v2607_v30, %v2606_v23 }
0x13e5   :  { %3263 = vmatprep.subr.bf16.mxu0 %v3262_v31 }
0x13e6   :  { %3265 = vmatpush3.bf16.msra.mxu0 %v3262_v31 }
0x13e7   :  { %3272 = vmatprep.subr.bf16.mxu0 %v3342_v3 }
0x14b1   :  { %v3049_v28 = vpop.f32.mrb[26].mxu0 }
0x14b2   :  { %v2020_v29 = vpop.f32.mrb[27].mxu0 }
0x14b3   :  { %3061 = vmatprep.mubr.msk.f32.mxu1 %vm67_vm1, %v2020_v29 }
0x14b4   :  { %3062 = vmatmul.mubr.msk.f32.vlgmr.msra.gmra.mrb[30].mxu1 %vm67_vm1, %v3049_v28 }
0x14b5   :  { %v3052_v20 = vpop.f32.mrb[28].mxu0 }
0x14b6   :  { %v2030_v22 = vpop.f32.mrb[29].mxu0 }
0x14b7   :  { %3064 = vmatprep.mubr.msk.f32.mxu1 %vm67_vm1, %v2030_v22 }
0x14b8   :  { %3065 = vmatmul.mubr.msk.f32.gmra.mrb[32].mxu1 %vm67_vm1, %v3052_v20 }
0x14b9   :  { %3089 = vmatprep.mubr.msk.f32.mxu1 %vm3343_vm0, %v3344_v6 }
0x1587   :  { %v3063_v34 = vpop.f32.mrb[30].mxu1 }
0x1588   :  { %v2117_v35 = vpop.f32.mrb[31].mxu1  ;;  %v2137_v37 = vmul.f32 %v3063_v34, %v3475_v25 }
0x1589   :  { %v2136_v36 = vmul.f32 %v2117_v35, %v3480_v26 }
0x158b   :  { %v3066_v39 = vpop.f32.mrb[32].mxu1  ;;  %3075 = vmatprep.mubr.msk.f32.mxu0 %vm67_vm1, %v2136_v36 }
0x158c   :  { %v2127_v44 = vpop.f32.mrb[33].mxu1  ;;  %3076 = vmatmul.mubr.msk.f32.vlgmr.msra.gmra.mrb[30].mxu0 %vm67_vm1, %v2137_v37  ;;  %v2139_v46 = vmul.f32 %v3066_v39, %v3487_v32 }
0x158d   :  { %v2138_v45 = vmul.f32 %v2127_v44, %v3492_v33 }
0x158f   :  { %3078 = vmatprep.mubr.msk.f32.mxu0 %vm67_vm1, %v2138_v45 }
0x1590   :  { %3079 = vmatmul.mubr.msk.f32.gmra.mrb[32].mxu0 %vm67_vm1, %v2139_v46  ;;  %v2496_v46 = vrot.slane %v35_v10, %v836_v50 }
0x1591   :  { %3100 = vmatprep.mubr.msk.f32.mxu0 %vm3343_vm0, %v3344_v6 }
0x165f   :  { %v3077_v26 = vpop.f32.mrb[30].mxu0 }
0x1660   :  { %v2218_v47 = vpop.f32.mrb[31].mxu0 }
0x1661   :  { %v3267_v25 = vpack.c.bf16 %v3077_v26, %v2218_v47 }
0x1663   :  { %v3080_v48 = vpop.f32.mrb[32].mxu0  ;;  %3268 = vmatpush3.bf16.msra.mxu1 %v3267_v25  ;;  %v2501_v25 = vrot.slane %v35_v10, %v841_v61 }
0x1664   :  { %v2228_v49 = vpop.f32.mrb[33].mxu0  ;;  %3269 = vmatprep.subr.bf16.mxu1 %v3342_v3 }
0x1665   :  { %v3270_v51 = vpack.c.bf16 %v3080_v48, %v2228_v49 }
0x1667   :  { %3271 = vmatpush3.bf16.msra.mxu1 %v3270_v51 }
0x1668   :  { %3278 = vmatprep.subr.bf16.mxu1 %v3342_v3 }
0x166a   :  { %3090 = vmatmul.mubr.msk.f32.vlgmr.msra.gmra.mrb[34].mxu1 %vm67_vm1, %v3791_v2  ;;  %v2611_v2 = vld [vmem:[%s3925_s5 + $0x58] sm:$0xff] }
0x166b   :  { %3119 = vmatprep.mubr.msk.f32.mxu1 %vm3343_vm0, %v3344_v6  ;;  %v2609_v6 = vld [vmem:[%s3925_s5 + $0x48] sm:$0xff]  ;;  %v3276_v5 = vpack.c.bf16 %v2611_v2, %v2610_v0  ;;  %3280 = vmatpush3.bf16.msra.mxu1 %v3279_v4 }
0x166c   :  { %3281 = vmatprep.subr.bf16.mxu1 %v3342_v3 }
0x166f   :  { %3283 = vmatpush3.bf16.msra.mxu1 %v3282_v24 }
0x1670   :  { %3284 = vmatprep.subr.bf16.mxu1 %v3342_v3 }
0x1673   :  { %3286 = vmatpush3.bf16.msra.mxu1 %v3285_v11 }
0x1674   :  { %3287 = vmatprep.subr.bf16.mxu1 %v3342_v3 }
0x173d   :  { %v2306_v32 = vpop.f32.mrb[34].mxu1 }
0x173e   :  { %v2307_v33 = vadd.f32 %v2306_v32, %v3768_v59  ;;  %v3091_v53 = vpop.f32.mrb[35].mxu1  ;;  %v3273_v59 = vpack.c.bf16 %v2609_v6, %v2608_v62 }
0x1740   :  { %v2310_v54 = vsel %vm67_vm1, %v2307_v33, 0.0  ;;  %3274 = vmatpush3.bf16.msra.mxu0 %v3273_v59 }
0x1741   :  { %2311 = vadd.xlane.f32.xlu1 %v2310_v54  ;;  %3275 = vmatprep.subr.bf16.mxu0 %v3342_v3  ;;  %v2618_v3 = vld [vmem:[%s3926_s6 + $0xb0] sm:$0xff]  ;;  %s3347_s6 = smov [#allocation2]  }
0x1742   :  { %v3288_v28 = vpack.c.bf16 %v2619_v27, %v2618_v3  ;;  %s2528_s7 = sshll.u32 %s3347_s6, 4  ;;  %s2529_s7 = int_to_ptr.vmem [resolvable:$true] %s2528_s7 }
0x1743   :  { %s3318_s12 = scalar_lea.vmem %s2529_s7, 16  ;;  %s3322_s13 = scalar_lea.vmem %s2529_s7, 32 }
0x1744   :  { %3277 = vmatpush3.bf16.msra.mxu0 %v3276_v5  ;;  %3289 = vmatpush3.bf16.msra.mxu1 %v3288_v28  ;;  %p3319_p0 = scmp.ne.s32.totalorder %s2529_s7, %s3318_s12  ;;  %p3323_p1 = scmp.lt.s32.totalorder %s2529_s7, %s2529_s7 }
0x1745   :  { %p3324_p2 = scmp.lt.s32.totalorder %s3322_s13, %s3318_s12 }
0x1747   :  { %p3325_p3 = por %p3324_p2, %p3323_p1 }
0x1749   :  { %p3326_p4 = pnand %p3325_p3, %p3319_p0 }
0x17ce   :  { %v2312_v55 = vpop.xlane.xlu1 %2311 }
0x17cf   :  { %v2313_v56 = vmul.f32 0.03125, %v2312_v55 }
0x17d1   :  { %v2314_v58 = vsub.f32 %v2307_v33, %v2313_v56  ;;  %v2510_v33 = vand.u32 127, %v663_v38 }
0x17d3   :  { %v2315_v60 = vmul.f32 %v2314_v58, %v2314_v58  ;;  %vm2511_vm4 = vcmp.eq.s32.totalorder %v3576_v40, %v2510_v33 }
0x17d5   :  { %v2316_v8 = vsel %vm67_vm1, %v2315_v60, 0.0 }
0x17d6   :  { %2317 = vadd.xlane.f32.xlu1 %v2316_v8 }
0x1863   :  { %v2318_v63 = vpop.xlane.xlu1 %2317 }
0x1864   :  { %v2319_v13 = vmul.f32 0.03125, %v2318_v63 }
0x1866   :  { %v2320_v57 = vadd.f32 1e-05, %v2319_v13 }
0x1868   :  { %3314 = vrsqrt.f32 %v2320_v57 }
0x1872   :  { %v3315_v15 = vpop.eup %3314 }
0x1873   :  { %v2322_v17 = vmul.f32 %v3315_v15, %v2314_v58 }
0x1875   :  { %v2327_v19 = vmul.f32 %v2326_v14, %v2322_v17 }
0x1877   :  { %v2332_v18 = vadd.f32 %v2331_v16, %v2327_v19 }
0x1879   :  { %3101 = vmatmul.mubr.msk.f32.vlgmr.msra.gmra.mrb[34].mxu0 %vm67_vm1, %v2332_v18 }
0x194c   :  { %v2402_v41 = vpop.f32.mrb[34].mxu0 }
0x194d   :  { %v2406_v29 = vmax.f32 %v2402_v41, 0.0  ;;  %v3102_v20 = vpop.f32.mrb[35].mxu0 }
0x194f   :  { %3120 = vmatmul.mubr.msk.f32.vlgmr.msra.gmra.mrb[36].mxu1 %vm747_vm3, %v2406_v29 }
0x1a22   :  { %v2476_v43 = vpop.f32.mrb[36].mxu1 }
0x1a23   :  { %v2477_v22 = vadd.f32 %v2476_v43, %v2332_v18  ;;  %v3121_v23 = vpop.f32.mrb[37].mxu1 }
0x1a25   :  { %v2480_v30 = vsel %vm67_vm1, %v2477_v22, 0.0 }
0x1a26   :  { %2481 = vadd.xlane.f32.xlu1 %v2480_v30 }
0x1ab3   :  { %v2482_v31 = vpop.xlane.xlu1 %2481 }
0x1ab4   :  { %v2483_v34 = vmul.f32 0.03125, %v2482_v31 }
0x1ab6   :  { %v2484_v35 = vsub.f32 %v2477_v22, %v2483_v34 }
0x1ab8   :  { %v2485_v36 = vmul.f32 %v2484_v35, %v2484_v35 }
0x1aba   :  { %v2486_v37 = vsel %vm67_vm1, %v2485_v36, 0.0 }
0x1abb   :  { %2487 = vadd.xlane.f32.xlu0 %v2486_v37 }
0x1b48   :  { %v2488_v39 = vpop.xlane.xlu0 %2487 }
0x1b49   :  { %v2489_v44 = vmul.f32 0.03125, %v2488_v39 }
0x1b4b   :  { %v2490_v45 = vadd.f32 1e-05, %v2489_v44 }
0x1b4d   :  { %3316 = vrsqrt.f32 %v2490_v45 }
0x1b57   :  { %v3317_v26 = vpop.eup %3316 }
0x1b58   :  { %v2492_v47 = vmul.f32 %v3317_v26, %v2484_v35 }
0x1b5a   :  { %v2497_v48 = vmul.f32 %v2496_v46, %v2492_v47 }
0x1b5c   :  { %v2502_v49 = vadd.f32 %v2501_v25, %v2497_v48 }
0x1b5e   :  { %v2503_v51 = vmul.f32 %v2502_v49, %v3782_v1 }
0x1b60   :  { %v2504_v32 = vsel %vm67_vm1, %v2503_v51, 0.0 }
0x1b61   :  { %2505 = vadd.xlane.f32.xlu1 %v2504_v32 }
0x1bee   :  { %v2506_v53 = vpop.xlane.xlu1 %2505 }
0x1bef   :  { %v2512_v54 = vsel %vm2511_vm4, %v2506_v53, 0.0 }
0x1bf0   :  { %v2513_v50 = vsel %vm180_vm2, %v2512_v54, 0.0 }
0x1bf1   :  { %v2514_v55 = vrot.slane %v2513_v50, 4 }
0x1bf3   :  { %v2515_v56 = vadd.f32 %v2514_v55, %v2513_v50 }
0x1bf5   :  { %v2516_v58 = vrot.slane %v2515_v56, 2 }
0x1bf7   :  { %v2517_v60 = vadd.f32 %v2516_v58, %v2515_v56 }
0x1bf9   :  { %v2518_v61 = vrot.slane %v2517_v60, 1 }
0x1bfb   :  { %v2519_v1 = vadd.f32 %v2518_v61, %v2517_v60 }
0x1bfd   :  { %2521 = vst.msk [vmem:[#allocation2] sm:$0x1] %vm2520_vm5, %v2519_v1 }
0x1bfe   :  { %3329 = shalt.err (!%p3326_p4)
}
0x1bff   :  { %s3330_s14 = scalar_lea.hbm %s3929_s9, 16 }
0x1c00   :  { %p3331_p5 = scmp.ne.s32.totalorder %s3929_s9, %s3330_s14  ;;  %p3334_p6 = scmp.lt.u32.totalorder %s3330_s14, %s3929_s9 }
0x1c02   :  { %p3336_p7 = pnand %p3334_p6, %p3331_p5 }
0x1c04   :  { %3339 = shalt.err (!%p3336_p7)
}
0x1c05   :  { %2531 = dma.vmem_to_hbm [thread:$0]  %s2529_s7, 16, %s3929_s9, [#allocation3]  }
0x1c06   :  { %3340 = dma.done.wait [#allocation3], 16  }
0x1c07   :  { %3341 = vsyncadd [#allocation3], 4294967280 }
0x1c08   :  { %2535 = vsyncpa [#allocation3], 1 }

</bundles_post_ra>
